<compile_context>
chip_gen: v5e
topology: v5e:2x2
jax: 0.10.0
libtpu: 0.0.40
codegen_flags: <defaults>
</compile_context>

<pallas_src>
import functools

import jax
import jax.numpy as jnp
from jax.experimental import pallas as pl
from jax.experimental.pallas import tpu as pltpu  # noqa: F401  (kept for TPU-specific tuning hooks)

# ---- small synthetic BERT config (deterministic, in-script init) ------------
VOCAB = 100
TYPE_VOCAB = 2
MAX_POS = 16
HIDDEN = 32
N_LAYERS = 2
N_HEADS = 2
HEAD_DIM = HIDDEN // N_HEADS
INTERMEDIATE = 64
LN_EPS = 1e-12

BATCH = 2
SEQ = 8


# -------------------------- fused Pallas kernel ------------------------------
def _bert_fused_kernel(h_ref, emb_g_ref, emb_b_ref,
                       wqkv_ref, bqkv_ref, wo_ref, bo_ref,
                       ln1_g_ref, ln1_b_ref, w1_ref, b1_ref, w2_ref, b2_ref,
                       ln2_g_ref, ln2_b_ref, pool_w_ref, pool_b_ref,
                       out_ref, *, batch, seq, n_layers, n_heads, head_dim):
    hidden = n_heads * head_dim

    def layer_norm(x, g, b):
        mu = jnp.mean(x, axis=-1, keepdims=True)
        xc = x - mu
        var = jnp.mean(xc * xc, axis=-1, keepdims=True)
        return xc * jax.lax.rsqrt(var + LN_EPS) * g + b

    def matmul(x, w):
        # bf16 inputs + f32 accumulate = native MXU datapath on v5e/v6e/v7x.
        return jnp.dot(x.astype(jnp.bfloat16), w.astype(jnp.bfloat16),
                       preferred_element_type=jnp.float32)

    def gelu(x):  # tanh-approximate GELU (kept in f32 on the VPU/EUP)
        return 0.5 * x * (1.0 + jnp.tanh(
            0.7978845608028654 * (x + 0.044715 * x * x * x)))

    # Embedding LayerNorm.
    h = layer_norm(h_ref[...], emb_g_ref[...], emb_b_ref[...])   # [M, H]

    scale = 1.0 / (head_dim ** 0.5)

    for l in range(n_layers):                      # static unroll (2 layers)
        # Fused QKV projection: one [M, 3H] matmul instead of three [M, H].
        qkv = matmul(h, wqkv_ref[l]) + bqkv_ref[l]                # [M, 3H]

        head_ctx = []
        for hh in range(n_heads):                  # static unroll (2 heads)
            lo = hh * head_dim
            qh = qkv[:, lo:lo + head_dim].reshape(batch, seq, head_dim)
            kh = qkv[:, hidden + lo:hidden + lo + head_dim].reshape(
                batch, seq, head_dim)
            vh = qkv[:, 2 * hidden + lo:2 * hidden + lo + head_dim].reshape(
                batch, seq, head_dim)

            # scores: contract on last dim (no transpose materialized).
            s = jnp.einsum('bqd,bkd->bqk',
                           qh.astype(jnp.bfloat16), kh.astype(jnp.bfloat16),
                           preferred_element_type=jnp.float32) * scale
            s = s - jnp.max(s, axis=-1, keepdims=True)
            p = jnp.exp(s)
            p = p * pl.reciprocal(jnp.sum(p, axis=-1, keepdims=True),
                                  approx=True)
            ctx = jnp.einsum('bqk,bkd->bqd',
                             p.astype(jnp.bfloat16), vh.astype(jnp.bfloat16),
                             preferred_element_type=jnp.float32)
            head_ctx.append(ctx.reshape(batch * seq, head_dim))

        ctx = jnp.concatenate(head_ctx, axis=-1)                  # [M, H]

        attn_out = matmul(ctx, wo_ref[l]) + bo_ref[l]
        h = layer_norm(h + attn_out, ln1_g_ref[l], ln1_b_ref[l])

        ff = gelu(matmul(h, w1_ref[l]) + b1_ref[l])               # [M, I]
        ff = matmul(ff, w2_ref[l]) + b2_ref[l]                    # [M, H]
        h = layer_norm(h + ff, ln2_g_ref[l], ln2_b_ref[l])

    # Pooler: dense + tanh on the [CLS] (position 0) hidden state.
    cls = h.reshape(batch, seq, hidden)[:, 0, :]                  # [B, H]
    pooled = jnp.tanh(matmul(cls, pool_w_ref[...]) + pool_b_ref[...])
    out_ref[...] = pooled.astype(out_ref.dtype)


# -------------------------- parameter init ----------------------------------
def init_params(key):
    def nrm(k, shape):
        return (0.02 * jax.random.normal(k, shape, jnp.float32)).astype(jnp.float32)

    k = jax.random.split(key, 8)
    L, H, I = N_LAYERS, HIDDEN, INTERMEDIATE
    return {
        "word_emb": nrm(k[0], (VOCAB, H)),
        "pos_emb": nrm(k[1], (MAX_POS, H)),
        "type_emb": nrm(k[2], (TYPE_VOCAB, H)),
        "emb_ln_g": jnp.ones((1, H), jnp.float32),
        "emb_ln_b": jnp.zeros((1, H), jnp.float32),
        # per-layer weights stacked on a leading layer axis; QKV concatenated.
        "wqkv": nrm(k[3], (L, H, 3 * H)),
        "bqkv": jnp.zeros((L, 1, 3 * H), jnp.float32),
        "wo": nrm(k[4], (L, H, H)),
        "bo": jnp.zeros((L, 1, H), jnp.float32),
        "ln1_g": jnp.ones((L, 1, H), jnp.float32),
        "ln1_b": jnp.zeros((L, 1, H), jnp.float32),
        "w1": nrm(k[5], (L, H, I)),
        "b1": jnp.zeros((L, 1, I), jnp.float32),
        "w2": nrm(k[6], (L, I, H)),
        "b2": jnp.zeros((L, 1, H), jnp.float32),
        "ln2_g": jnp.ones((L, 1, H), jnp.float32),
        "ln2_b": jnp.zeros((L, 1, H), jnp.float32),
        "pool_w": nrm(k[7], (H, H)),
        "pool_b": jnp.zeros((1, H), jnp.float32),
    }


# -------------------------- forward pass -------------------------------------
def bert_encoder_forward(params, token_ids):
    """Equivalent of BertEncoder.forward: runs BertModel(x) and returns the
    pooled output `y` of shape [B, HIDDEN]."""
    B, S = token_ids.shape

    # Embedding gathers are glue (plain JAX); attention_mask = ones and
    # token_type_ids = zeros, as in BertModel(x) called with ids only.
    word = params["word_emb"][token_ids]                       # [B, S, H]
    pos = params["pos_emb"][jnp.arange(S)][None, :, :]         # [1, S, H]
    typ = params["type_emb"][0][None, None, :]                 # [1, 1, H]
    h = (word + pos + typ).reshape(B * S, HIDDEN).astype(jnp.float32)

    kern = functools.partial(
        _bert_fused_kernel, batch=B, seq=S, n_layers=N_LAYERS,
        n_heads=N_HEADS, head_dim=HEAD_DIM)

    # Single invocation, no grid: all weights + activations are VMEM-resident
    # for the whole forward, so there is exactly one kernel launch and no
    # intermediate HBM traffic.
    return pl.pallas_call(
        kern,
        out_shape=jax.ShapeDtypeStruct((B, HIDDEN), jnp.float32),
    )(h,
      params["emb_ln_g"], params["emb_ln_b"],
      params["wqkv"], params["bqkv"], params["wo"], params["bo"],
      params["ln1_g"], params["ln1_b"],
      params["w1"], params["b1"], params["w2"], params["b2"],
      params["ln2_g"], params["ln2_b"],
      params["pool_w"], params["pool_b"])


# -------------------------- main ---------------------------------------------
if __name__ == "__main__":
    key = jax.random.PRNGKey(0)
    pkey, xkey = jax.random.split(key)
    params = init_params(pkey)
    token_ids = jax.random.randint(xkey, (BATCH, SEQ), 0, VOCAB, dtype=jnp.int32)

    y = jax.jit(bert_encoder_forward)(params, token_ids)
    jax.block_until_ready(y)
    assert y.shape == (BATCH, HIDDEN) and y.dtype == jnp.float32
    print("KERNEL_OK")
</pallas_src>

<mosaic_0001>
module attributes {stable_mosaic.version = 11 : i64} {
  func.func @_bert_fused_kernel(%arg0: memref<16x32xf32, #tpu.memory_space<vmem>>, %arg1: memref<1x32xf32, #tpu.memory_space<vmem>>, %arg2: memref<1x32xf32, #tpu.memory_space<vmem>>, %arg3: memref<2x32x96xf32, #tpu.memory_space<vmem>>, %arg4: memref<2x1x96xf32, #tpu.memory_space<vmem>>, %arg5: memref<2x32x32xf32, #tpu.memory_space<vmem>>, %arg6: memref<2x1x32xf32, #tpu.memory_space<vmem>>, %arg7: memref<2x1x32xf32, #tpu.memory_space<vmem>>, %arg8: memref<2x1x32xf32, #tpu.memory_space<vmem>>, %arg9: memref<2x32x64xf32, #tpu.memory_space<vmem>>, %arg10: memref<2x1x64xf32, #tpu.memory_space<vmem>>, %arg11: memref<2x64x32xf32, #tpu.memory_space<vmem>>, %arg12: memref<2x1x32xf32, #tpu.memory_space<vmem>>, %arg13: memref<2x1x32xf32, #tpu.memory_space<vmem>>, %arg14: memref<2x1x32xf32, #tpu.memory_space<vmem>>, %arg15: memref<32x32xf32, #tpu.memory_space<vmem>>, %arg16: memref<1x32xf32, #tpu.memory_space<vmem>>, %arg17: memref<2x32xf32, #tpu.memory_space<vmem>>) attributes {dimension_semantics = [], scalar_prefetch = 0 : i64, scratch_operands = 0 : i64, tpu.core_type = #tpu.core_type<tc>} {
    %c0 = arith.constant 0 : index
    %c0_0 = arith.constant 0 : index
    %0 = vector.load %arg0[%c0, %c0_0] : memref<16x32xf32, #tpu.memory_space<vmem>>, vector<16x32xf32>
    %c0_1 = arith.constant 0 : index
    %c0_2 = arith.constant 0 : index
    %1 = vector.load %arg1[%c0_1, %c0_2] : memref<1x32xf32, #tpu.memory_space<vmem>>, vector<1x32xf32>
    %c0_3 = arith.constant 0 : index
    %c0_4 = arith.constant 0 : index
    %2 = vector.load %arg2[%c0_3, %c0_4] : memref<1x32xf32, #tpu.memory_space<vmem>>, vector<1x32xf32>
    %cst = arith.constant dense<0.000000e+00> : vector<16xf32>
    %3 = vector.multi_reduction <add>, %0, %cst [1] : vector<16x32xf32> to vector<16xf32>
    %4 = vector.shape_cast %3 : vector<16xf32> to vector<16x1xf32>
    %cst_5 = arith.constant 3.200000e+01 : f32
    %5 = vector.broadcast %cst_5 : f32 to vector<16x1xf32>
    %6 = arith.divf %4, %5 : vector<16x1xf32>
    %7 = vector.broadcast %6 : vector<16x1xf32> to vector<16x32xf32>
    %8 = arith.subf %0, %7 : vector<16x32xf32>
    %9 = arith.mulf %8, %8 : vector<16x32xf32>
    %cst_6 = arith.constant dense<0.000000e+00> : vector<16xf32>
    %10 = vector.multi_reduction <add>, %9, %cst_6 [1] : vector<16x32xf32> to vector<16xf32>
    %11 = vector.shape_cast %10 : vector<16xf32> to vector<16x1xf32>
    %cst_7 = arith.constant 3.200000e+01 : f32
    %12 = vector.broadcast %cst_7 : f32 to vector<16x1xf32>
    %13 = arith.divf %11, %12 : vector<16x1xf32>
    %cst_8 = arith.constant 9.99999996E-13 : f32
    %14 = vector.broadcast %cst_8 : f32 to vector<16x1xf32>
    %15 = arith.addf %13, %14 : vector<16x1xf32>
    %16 = math.rsqrt %15 : vector<16x1xf32>
    %17 = vector.broadcast %16 : vector<16x1xf32> to vector<16x32xf32>
    %18 = arith.mulf %8, %17 : vector<16x32xf32>
    %19 = vector.broadcast %1 : vector<1x32xf32> to vector<16x32xf32>
    %20 = arith.mulf %18, %19 : vector<16x32xf32>
    %21 = vector.broadcast %2 : vector<1x32xf32> to vector<16x32xf32>
    %22 = arith.addf %20, %21 : vector<16x32xf32>
    %c0_9 = arith.constant 0 : index
    %c0_10 = arith.constant 0 : index
    %c0_11 = arith.constant 0 : index
    %23 = vector.load %arg3[%c0_9, %c0_10, %c0_11] : memref<2x32x96xf32, #tpu.memory_space<vmem>>, vector<1x32x96xf32>
    %24 = vector.shape_cast %23 : vector<1x32x96xf32> to vector<32x96xf32>
    %25 = arith.truncf %22 : vector<16x32xf32> to vector<16x32xbf16>
    %26 = arith.truncf %24 : vector<32x96xf32> to vector<32x96xbf16>
    %cst_12 = arith.constant dense<0.000000e+00> : vector<16x96xf32>
    %27 = tpu.matmul %25, %26, %cst_12 {dimension_numbers = #tpu.dot_dimension_numbers<[1], [0], [0], [1], [0, 0, 1, 1], [], []>} : vector<16x32xbf16>, vector<32x96xbf16>, vector<16x96xf32> -> vector<16x96xf32>
    %c0_13 = arith.constant 0 : index
    %c0_14 = arith.constant 0 : index
    %c0_15 = arith.constant 0 : index
    %28 = vector.load %arg4[%c0_13, %c0_14, %c0_15] : memref<2x1x96xf32, #tpu.memory_space<vmem>>, vector<1x1x96xf32>
    %29 = vector.shape_cast %28 : vector<1x1x96xf32> to vector<1x96xf32>
    %30 = vector.broadcast %29 : vector<1x96xf32> to vector<16x96xf32>
    %31 = arith.addf %27, %30 : vector<16x96xf32>
    %32 = vector.extract_strided_slice %31 {offsets = [0, 0], sizes = [16, 16], strides = [1, 1]} : vector<16x96xf32> to vector<16x16xf32>
    %33 = vector.shape_cast %32 : vector<16x16xf32> to vector<2x8x16xf32>
    %34 = vector.extract_strided_slice %31 {offsets = [0, 32], sizes = [16, 16], strides = [1, 1]} : vector<16x96xf32> to vector<16x16xf32>
    %35 = vector.shape_cast %34 : vector<16x16xf32> to vector<2x8x16xf32>
    %36 = vector.extract_strided_slice %31 {offsets = [0, 64], sizes = [16, 16], strides = [1, 1]} : vector<16x96xf32> to vector<16x16xf32>
    %37 = vector.shape_cast %36 : vector<16x16xf32> to vector<2x8x16xf32>
    %38 = arith.truncf %33 : vector<2x8x16xf32> to vector<2x8x16xbf16>
    %39 = arith.truncf %35 : vector<2x8x16xf32> to vector<2x8x16xbf16>
    "tpu.trace_start"() <{level = 10 : i32, message = "bqd,bkd->bqk"}> : () -> ()
    %cst_16 = arith.constant dense<0.000000e+00> : vector<2x8x8xf32>
    %40 = tpu.matmul %38, %39, %cst_16 {dimension_numbers = #tpu.dot_dimension_numbers<[2], [2], [1], [1], [0, 0, 0, 1, 1, 1], [0], [0]>} : vector<2x8x16xbf16>, vector<2x8x16xbf16>, vector<2x8x8xf32> -> vector<2x8x8xf32>
    "tpu.trace_stop"() : () -> ()
    %cst_17 = arith.constant 2.500000e-01 : f32
    %41 = vector.broadcast %cst_17 : f32 to vector<2x8x8xf32>
    %42 = arith.mulf %40, %41 : vector<2x8x8xf32>
    %cst_18 = arith.constant dense<0xFF800000> : vector<2x8xf32>
    %43 = vector.multi_reduction <maximumf>, %42, %cst_18 [2] : vector<2x8x8xf32> to vector<2x8xf32>
    %44 = vector.shape_cast %43 : vector<2x8xf32> to vector<2x8x1xf32>
    %45 = vector.broadcast %44 : vector<2x8x1xf32> to vector<2x8x8xf32>
    %46 = arith.subf %42, %45 : vector<2x8x8xf32>
    %47 = math.exp %46 : vector<2x8x8xf32>
    %cst_19 = arith.constant dense<0.000000e+00> : vector<2x8xf32>
    %48 = vector.multi_reduction <add>, %47, %cst_19 [2] : vector<2x8x8xf32> to vector<2x8xf32>
    %49 = vector.shape_cast %48 : vector<2x8xf32> to vector<2x8x1xf32>
    %50 = tpu.reciprocal %49 {approx = true} : vector<2x8x1xf32> -> vector<2x8x1xf32>
    %51 = vector.broadcast %50 : vector<2x8x1xf32> to vector<2x8x8xf32>
    %52 = arith.mulf %47, %51 : vector<2x8x8xf32>
    %53 = arith.truncf %52 : vector<2x8x8xf32> to vector<2x8x8xbf16>
    %54 = arith.truncf %37 : vector<2x8x16xf32> to vector<2x8x16xbf16>
    "tpu.trace_start"() <{level = 10 : i32, message = "bqk,bkd->bqd"}> : () -> ()
    %cst_20 = arith.constant dense<0.000000e+00> : vector<2x8x16xf32>
    %55 = tpu.matmul %53, %54, %cst_20 {dimension_numbers = #tpu.dot_dimension_numbers<[2], [1], [1], [2], [0, 0, 0, 1, 1, 2], [0], [0]>} : vector<2x8x8xbf16>, vector<2x8x16xbf16>, vector<2x8x16xf32> -> vector<2x8x16xf32>
    "tpu.trace_stop"() : () -> ()
    %56 = vector.shape_cast %55 : vector<2x8x16xf32> to vector<16x16xf32>
    %57 = vector.extract_strided_slice %31 {offsets = [0, 16], sizes = [16, 16], strides = [1, 1]} : vector<16x96xf32> to vector<16x16xf32>
    %58 = vector.shape_cast %57 : vector<16x16xf32> to vector<2x8x16xf32>
    %59 = vector.extract_strided_slice %31 {offsets = [0, 48], sizes = [16, 16], strides = [1, 1]} : vector<16x96xf32> to vector<16x16xf32>
    %60 = vector.shape_cast %59 : vector<16x16xf32> to vector<2x8x16xf32>
    %61 = vector.extract_strided_slice %31 {offsets = [0, 80], sizes = [16, 16], strides = [1, 1]} : vector<16x96xf32> to vector<16x16xf32>
    %62 = vector.shape_cast %61 : vector<16x16xf32> to vector<2x8x16xf32>
    %63 = arith.truncf %58 : vector<2x8x16xf32> to vector<2x8x16xbf16>
    %64 = arith.truncf %60 : vector<2x8x16xf32> to vector<2x8x16xbf16>
    "tpu.trace_start"() <{level = 10 : i32, message = "bqd,bkd->bqk"}> : () -> ()
    %cst_21 = arith.constant dense<0.000000e+00> : vector<2x8x8xf32>
    %65 = tpu.matmul %63, %64, %cst_21 {dimension_numbers = #tpu.dot_dimension_numbers<[2], [2], [1], [1], [0, 0, 0, 1, 1, 1], [0], [0]>} : vector<2x8x16xbf16>, vector<2x8x16xbf16>, vector<2x8x8xf32> -> vector<2x8x8xf32>
    "tpu.trace_stop"() : () -> ()
    %cst_22 = arith.constant 2.500000e-01 : f32
    %66 = vector.broadcast %cst_22 : f32 to vector<2x8x8xf32>
    %67 = arith.mulf %65, %66 : vector<2x8x8xf32>
    %cst_23 = arith.constant dense<0xFF800000> : vector<2x8xf32>
    %68 = vector.multi_reduction <maximumf>, %67, %cst_23 [2] : vector<2x8x8xf32> to vector<2x8xf32>
    %69 = vector.shape_cast %68 : vector<2x8xf32> to vector<2x8x1xf32>
    %70 = vector.broadcast %69 : vector<2x8x1xf32> to vector<2x8x8xf32>
    %71 = arith.subf %67, %70 : vector<2x8x8xf32>
    %72 = math.exp %71 : vector<2x8x8xf32>
    %cst_24 = arith.constant dense<0.000000e+00> : vector<2x8xf32>
    %73 = vector.multi_reduction <add>, %72, %cst_24 [2] : vector<2x8x8xf32> to vector<2x8xf32>
    %74 = vector.shape_cast %73 : vector<2x8xf32> to vector<2x8x1xf32>
    %75 = tpu.reciprocal %74 {approx = true} : vector<2x8x1xf32> -> vector<2x8x1xf32>
    %76 = vector.broadcast %75 : vector<2x8x1xf32> to vector<2x8x8xf32>
    %77 = arith.mulf %72, %76 : vector<2x8x8xf32>
    %78 = arith.truncf %77 : vector<2x8x8xf32> to vector<2x8x8xbf16>
    %79 = arith.truncf %62 : vector<2x8x16xf32> to vector<2x8x16xbf16>
    "tpu.trace_start"() <{level = 10 : i32, message = "bqk,bkd->bqd"}> : () -> ()
    %cst_25 = arith.constant dense<0.000000e+00> : vector<2x8x16xf32>
    %80 = tpu.matmul %78, %79, %cst_25 {dimension_numbers = #tpu.dot_dimension_numbers<[2], [1], [1], [2], [0, 0, 0, 1, 1, 2], [0], [0]>} : vector<2x8x8xbf16>, vector<2x8x16xbf16>, vector<2x8x16xf32> -> vector<2x8x16xf32>
    "tpu.trace_stop"() : () -> ()
    %81 = vector.shape_cast %80 : vector<2x8x16xf32> to vector<16x16xf32>
    %82 = tpu.concatenate %56, %81 in 1 : vector<16x16xf32>, vector<16x16xf32> -> vector<16x32xf32>
    %c0_26 = arith.constant 0 : index
    %c0_27 = arith.constant 0 : index
    %c0_28 = arith.constant 0 : index
    %83 = vector.load %arg5[%c0_26, %c0_27, %c0_28] : memref<2x32x32xf32, #tpu.memory_space<vmem>>, vector<1x32x32xf32>
    %84 = vector.shape_cast %83 : vector<1x32x32xf32> to vector<32x32xf32>
    %85 = arith.truncf %82 : vector<16x32xf32> to vector<16x32xbf16>
    %86 = arith.truncf %84 : vector<32x32xf32> to vector<32x32xbf16>
    %cst_29 = arith.constant dense<0.000000e+00> : vector<16x32xf32>
    %87 = tpu.matmul %85, %86, %cst_29 {dimension_numbers = #tpu.dot_dimension_numbers<[1], [0], [0], [1], [0, 0, 1, 1], [], []>} : vector<16x32xbf16>, vector<32x32xbf16>, vector<16x32xf32> -> vector<16x32xf32>
    %c0_30 = arith.constant 0 : index
    %c0_31 = arith.constant 0 : index
    %c0_32 = arith.constant 0 : index
    %88 = vector.load %arg6[%c0_30, %c0_31, %c0_32] : memref<2x1x32xf32, #tpu.memory_space<vmem>>, vector<1x1x32xf32>
    %89 = vector.shape_cast %88 : vector<1x1x32xf32> to vector<1x32xf32>
    %90 = vector.broadcast %89 : vector<1x32xf32> to vector<16x32xf32>
    %91 = arith.addf %87, %90 : vector<16x32xf32>
    %92 = arith.addf %22, %91 : vector<16x32xf32>
    %c0_33 = arith.constant 0 : index
    %c0_34 = arith.constant 0 : index
    %c0_35 = arith.constant 0 : index
    %93 = vector.load %arg7[%c0_33, %c0_34, %c0_35] : memref<2x1x32xf32, #tpu.memory_space<vmem>>, vector<1x1x32xf32>
    %94 = vector.shape_cast %93 : vector<1x1x32xf32> to vector<1x32xf32>
    %c0_36 = arith.constant 0 : index
    %c0_37 = arith.constant 0 : index
    %c0_38 = arith.constant 0 : index
    %95 = vector.load %arg8[%c0_36, %c0_37, %c0_38] : memref<2x1x32xf32, #tpu.memory_space<vmem>>, vector<1x1x32xf32>
    %96 = vector.shape_cast %95 : vector<1x1x32xf32> to vector<1x32xf32>
    %cst_39 = arith.constant dense<0.000000e+00> : vector<16xf32>
    %97 = vector.multi_reduction <add>, %92, %cst_39 [1] : vector<16x32xf32> to vector<16xf32>
    %98 = vector.shape_cast %97 : vector<16xf32> to vector<16x1xf32>
    %cst_40 = arith.constant 3.200000e+01 : f32
    %99 = vector.broadcast %cst_40 : f32 to vector<16x1xf32>
    %100 = arith.divf %98, %99 : vector<16x1xf32>
    %101 = vector.broadcast %100 : vector<16x1xf32> to vector<16x32xf32>
    %102 = arith.subf %92, %101 : vector<16x32xf32>
    %103 = arith.mulf %102, %102 : vector<16x32xf32>
    %cst_41 = arith.constant dense<0.000000e+00> : vector<16xf32>
    %104 = vector.multi_reduction <add>, %103, %cst_41 [1] : vector<16x32xf32> to vector<16xf32>
    %105 = vector.shape_cast %104 : vector<16xf32> to vector<16x1xf32>
    %cst_42 = arith.constant 3.200000e+01 : f32
    %106 = vector.broadcast %cst_42 : f32 to vector<16x1xf32>
    %107 = arith.divf %105, %106 : vector<16x1xf32>
    %cst_43 = arith.constant 9.99999996E-13 : f32
    %108 = vector.broadcast %cst_43 : f32 to vector<16x1xf32>
    %109 = arith.addf %107, %108 : vector<16x1xf32>
    %110 = math.rsqrt %109 : vector<16x1xf32>
    %111 = vector.broadcast %110 : vector<16x1xf32> to vector<16x32xf32>
    %112 = arith.mulf %102, %111 : vector<16x32xf32>
    %113 = vector.broadcast %94 : vector<1x32xf32> to vector<16x32xf32>
    %114 = arith.mulf %112, %113 : vector<16x32xf32>
    %115 = vector.broadcast %96 : vector<1x32xf32> to vector<16x32xf32>
    %116 = arith.addf %114, %115 : vector<16x32xf32>
    %c0_44 = arith.constant 0 : index
    %c0_45 = arith.constant 0 : index
    %c0_46 = arith.constant 0 : index
    %117 = vector.load %arg9[%c0_44, %c0_45, %c0_46] : memref<2x32x64xf32, #tpu.memory_space<vmem>>, vector<1x32x64xf32>
    %118 = vector.shape_cast %117 : vector<1x32x64xf32> to vector<32x64xf32>
    %119 = arith.truncf %116 : vector<16x32xf32> to vector<16x32xbf16>
    %120 = arith.truncf %118 : vector<32x64xf32> to vector<32x64xbf16>
    %cst_47 = arith.constant dense<0.000000e+00> : vector<16x64xf32>
    %121 = tpu.matmul %119, %120, %cst_47 {dimension_numbers = #tpu.dot_dimension_numbers<[1], [0], [0], [1], [0, 0, 1, 1], [], []>} : vector<16x32xbf16>, vector<32x64xbf16>, vector<16x64xf32> -> vector<16x64xf32>
    %c0_48 = arith.constant 0 : index
    %c0_49 = arith.constant 0 : index
    %c0_50 = arith.constant 0 : index
    %122 = vector.load %arg10[%c0_48, %c0_49, %c0_50] : memref<2x1x64xf32, #tpu.memory_space<vmem>>, vector<1x1x64xf32>
    %123 = vector.shape_cast %122 : vector<1x1x64xf32> to vector<1x64xf32>
    %124 = vector.broadcast %123 : vector<1x64xf32> to vector<16x64xf32>
    %125 = arith.addf %121, %124 : vector<16x64xf32>
    %cst_51 = arith.constant 5.000000e-01 : f32
    %126 = vector.broadcast %cst_51 : f32 to vector<16x64xf32>
    %127 = arith.mulf %126, %125 : vector<16x64xf32>
    %cst_52 = arith.constant 4.471500e-02 : f32
    %128 = vector.broadcast %cst_52 : f32 to vector<16x64xf32>
    %129 = arith.mulf %128, %125 : vector<16x64xf32>
    %130 = arith.mulf %129, %125 : vector<16x64xf32>
    %131 = arith.mulf %130, %125 : vector<16x64xf32>
    %132 = arith.addf %125, %131 : vector<16x64xf32>
    %cst_53 = arith.constant 0.797884583 : f32
    %133 = vector.broadcast %cst_53 : f32 to vector<16x64xf32>
    %134 = arith.mulf %133, %132 : vector<16x64xf32>
    %135 = math.tanh %134 : vector<16x64xf32>
    %cst_54 = arith.constant 1.000000e+00 : f32
    %136 = vector.broadcast %cst_54 : f32 to vector<16x64xf32>
    %137 = arith.addf %136, %135 : vector<16x64xf32>
    %138 = arith.mulf %127, %137 : vector<16x64xf32>
    %c0_55 = arith.constant 0 : index
    %c0_56 = arith.constant 0 : index
    %c0_57 = arith.constant 0 : index
    %139 = vector.load %arg11[%c0_55, %c0_56, %c0_57] : memref<2x64x32xf32, #tpu.memory_space<vmem>>, vector<1x64x32xf32>
    %140 = vector.shape_cast %139 : vector<1x64x32xf32> to vector<64x32xf32>
    %141 = arith.truncf %138 : vector<16x64xf32> to vector<16x64xbf16>
    %142 = arith.truncf %140 : vector<64x32xf32> to vector<64x32xbf16>
    %cst_58 = arith.constant dense<0.000000e+00> : vector<16x32xf32>
    %143 = tpu.matmul %141, %142, %cst_58 {dimension_numbers = #tpu.dot_dimension_numbers<[1], [0], [0], [1], [0, 0, 1, 1], [], []>} : vector<16x64xbf16>, vector<64x32xbf16>, vector<16x32xf32> -> vector<16x32xf32>
    %c0_59 = arith.constant 0 : index
    %c0_60 = arith.constant 0 : index
    %c0_61 = arith.constant 0 : index
    %144 = vector.load %arg12[%c0_59, %c0_60, %c0_61] : memref<2x1x32xf32, #tpu.memory_space<vmem>>, vector<1x1x32xf32>
    %145 = vector.shape_cast %144 : vector<1x1x32xf32> to vector<1x32xf32>
    %146 = vector.broadcast %145 : vector<1x32xf32> to vector<16x32xf32>
    %147 = arith.addf %143, %146 : vector<16x32xf32>
    %148 = arith.addf %116, %147 : vector<16x32xf32>
    %c0_62 = arith.constant 0 : index
    %c0_63 = arith.constant 0 : index
    %c0_64 = arith.constant 0 : index
    %149 = vector.load %arg13[%c0_62, %c0_63, %c0_64] : memref<2x1x32xf32, #tpu.memory_space<vmem>>, vector<1x1x32xf32>
    %150 = vector.shape_cast %149 : vector<1x1x32xf32> to vector<1x32xf32>
    %c0_65 = arith.constant 0 : index
    %c0_66 = arith.constant 0 : index
    %c0_67 = arith.constant 0 : index
    %151 = vector.load %arg14[%c0_65, %c0_66, %c0_67] : memref<2x1x32xf32, #tpu.memory_space<vmem>>, vector<1x1x32xf32>
    %152 = vector.shape_cast %151 : vector<1x1x32xf32> to vector<1x32xf32>
    %cst_68 = arith.constant dense<0.000000e+00> : vector<16xf32>
    %153 = vector.multi_reduction <add>, %148, %cst_68 [1] : vector<16x32xf32> to vector<16xf32>
    %154 = vector.shape_cast %153 : vector<16xf32> to vector<16x1xf32>
    %cst_69 = arith.constant 3.200000e+01 : f32
    %155 = vector.broadcast %cst_69 : f32 to vector<16x1xf32>
    %156 = arith.divf %154, %155 : vector<16x1xf32>
    %157 = vector.broadcast %156 : vector<16x1xf32> to vector<16x32xf32>
    %158 = arith.subf %148, %157 : vector<16x32xf32>
    %159 = arith.mulf %158, %158 : vector<16x32xf32>
    %cst_70 = arith.constant dense<0.000000e+00> : vector<16xf32>
    %160 = vector.multi_reduction <add>, %159, %cst_70 [1] : vector<16x32xf32> to vector<16xf32>
    %161 = vector.shape_cast %160 : vector<16xf32> to vector<16x1xf32>
    %cst_71 = arith.constant 3.200000e+01 : f32
    %162 = vector.broadcast %cst_71 : f32 to vector<16x1xf32>
    %163 = arith.divf %161, %162 : vector<16x1xf32>
    %cst_72 = arith.constant 9.99999996E-13 : f32
    %164 = vector.broadcast %cst_72 : f32 to vector<16x1xf32>
    %165 = arith.addf %163, %164 : vector<16x1xf32>
    %166 = math.rsqrt %165 : vector<16x1xf32>
    %167 = vector.broadcast %166 : vector<16x1xf32> to vector<16x32xf32>
    %168 = arith.mulf %158, %167 : vector<16x32xf32>
    %169 = vector.broadcast %150 : vector<1x32xf32> to vector<16x32xf32>
    %170 = arith.mulf %168, %169 : vector<16x32xf32>
    %171 = vector.broadcast %152 : vector<1x32xf32> to vector<16x32xf32>
    %172 = arith.addf %170, %171 : vector<16x32xf32>
    %c1 = arith.constant 1 : index
    %c0_73 = arith.constant 0 : index
    %c0_74 = arith.constant 0 : index
    %173 = vector.load %arg3[%c1, %c0_73, %c0_74] : memref<2x32x96xf32, #tpu.memory_space<vmem>>, vector<1x32x96xf32>
    %174 = vector.shape_cast %173 : vector<1x32x96xf32> to vector<32x96xf32>
    %175 = arith.truncf %172 : vector<16x32xf32> to vector<16x32xbf16>
    %176 = arith.truncf %174 : vector<32x96xf32> to vector<32x96xbf16>
    %cst_75 = arith.constant dense<0.000000e+00> : vector<16x96xf32>
    %177 = tpu.matmul %175, %176, %cst_75 {dimension_numbers = #tpu.dot_dimension_numbers<[1], [0], [0], [1], [0, 0, 1, 1], [], []>} : vector<16x32xbf16>, vector<32x96xbf16>, vector<16x96xf32> -> vector<16x96xf32>
    %c1_76 = arith.constant 1 : index
    %c0_77 = arith.constant 0 : index
    %c0_78 = arith.constant 0 : index
    %178 = vector.load %arg4[%c1_76, %c0_77, %c0_78] : memref<2x1x96xf32, #tpu.memory_space<vmem>>, vector<1x1x96xf32>
    %179 = vector.shape_cast %178 : vector<1x1x96xf32> to vector<1x96xf32>
    %180 = vector.broadcast %179 : vector<1x96xf32> to vector<16x96xf32>
    %181 = arith.addf %177, %180 : vector<16x96xf32>
    %182 = vector.extract_strided_slice %181 {offsets = [0, 0], sizes = [16, 16], strides = [1, 1]} : vector<16x96xf32> to vector<16x16xf32>
    %183 = vector.shape_cast %182 : vector<16x16xf32> to vector<2x8x16xf32>
    %184 = vector.extract_strided_slice %181 {offsets = [0, 32], sizes = [16, 16], strides = [1, 1]} : vector<16x96xf32> to vector<16x16xf32>
    %185 = vector.shape_cast %184 : vector<16x16xf32> to vector<2x8x16xf32>
    %186 = vector.extract_strided_slice %181 {offsets = [0, 64], sizes = [16, 16], strides = [1, 1]} : vector<16x96xf32> to vector<16x16xf32>
    %187 = vector.shape_cast %186 : vector<16x16xf32> to vector<2x8x16xf32>
    %188 = arith.truncf %183 : vector<2x8x16xf32> to vector<2x8x16xbf16>
    %189 = arith.truncf %185 : vector<2x8x16xf32> to vector<2x8x16xbf16>
    "tpu.trace_start"() <{level = 10 : i32, message = "bqd,bkd->bqk"}> : () -> ()
    %cst_79 = arith.constant dense<0.000000e+00> : vector<2x8x8xf32>
    %190 = tpu.matmul %188, %189, %cst_79 {dimension_numbers = #tpu.dot_dimension_numbers<[2], [2], [1], [1], [0, 0, 0, 1, 1, 1], [0], [0]>} : vector<2x8x16xbf16>, vector<2x8x16xbf16>, vector<2x8x8xf32> -> vector<2x8x8xf32>
    "tpu.trace_stop"() : () -> ()
    %cst_80 = arith.constant 2.500000e-01 : f32
    %191 = vector.broadcast %cst_80 : f32 to vector<2x8x8xf32>
    %192 = arith.mulf %190, %191 : vector<2x8x8xf32>
    %cst_81 = arith.constant dense<0xFF800000> : vector<2x8xf32>
    %193 = vector.multi_reduction <maximumf>, %192, %cst_81 [2] : vector<2x8x8xf32> to vector<2x8xf32>
    %194 = vector.shape_cast %193 : vector<2x8xf32> to vector<2x8x1xf32>
    %195 = vector.broadcast %194 : vector<2x8x1xf32> to vector<2x8x8xf32>
    %196 = arith.subf %192, %195 : vector<2x8x8xf32>
    %197 = math.exp %196 : vector<2x8x8xf32>
    %cst_82 = arith.constant dense<0.000000e+00> : vector<2x8xf32>
    %198 = vector.multi_reduction <add>, %197, %cst_82 [2] : vector<2x8x8xf32> to vector<2x8xf32>
    %199 = vector.shape_cast %198 : vector<2x8xf32> to vector<2x8x1xf32>
    %200 = tpu.reciprocal %199 {approx = true} : vector<2x8x1xf32> -> vector<2x8x1xf32>
    %201 = vector.broadcast %200 : vector<2x8x1xf32> to vector<2x8x8xf32>
    %202 = arith.mulf %197, %201 : vector<2x8x8xf32>
    %203 = arith.truncf %202 : vector<2x8x8xf32> to vector<2x8x8xbf16>
    %204 = arith.truncf %187 : vector<2x8x16xf32> to vector<2x8x16xbf16>
    "tpu.trace_start"() <{level = 10 : i32, message = "bqk,bkd->bqd"}> : () -> ()
    %cst_83 = arith.constant dense<0.000000e+00> : vector<2x8x16xf32>
    %205 = tpu.matmul %203, %204, %cst_83 {dimension_numbers = #tpu.dot_dimension_numbers<[2], [1], [1], [2], [0, 0, 0, 1, 1, 2], [0], [0]>} : vector<2x8x8xbf16>, vector<2x8x16xbf16>, vector<2x8x16xf32> -> vector<2x8x16xf32>
    "tpu.trace_stop"() : () -> ()
    %206 = vector.shape_cast %205 : vector<2x8x16xf32> to vector<16x16xf32>
    %207 = vector.extract_strided_slice %181 {offsets = [0, 16], sizes = [16, 16], strides = [1, 1]} : vector<16x96xf32> to vector<16x16xf32>
    %208 = vector.shape_cast %207 : vector<16x16xf32> to vector<2x8x16xf32>
    %209 = vector.extract_strided_slice %181 {offsets = [0, 48], sizes = [16, 16], strides = [1, 1]} : vector<16x96xf32> to vector<16x16xf32>
    %210 = vector.shape_cast %209 : vector<16x16xf32> to vector<2x8x16xf32>
    %211 = vector.extract_strided_slice %181 {offsets = [0, 80], sizes = [16, 16], strides = [1, 1]} : vector<16x96xf32> to vector<16x16xf32>
    %212 = vector.shape_cast %211 : vector<16x16xf32> to vector<2x8x16xf32>
    %213 = arith.truncf %208 : vector<2x8x16xf32> to vector<2x8x16xbf16>
    %214 = arith.truncf %210 : vector<2x8x16xf32> to vector<2x8x16xbf16>
    "tpu.trace_start"() <{level = 10 : i32, message = "bqd,bkd->bqk"}> : () -> ()
    %cst_84 = arith.constant dense<0.000000e+00> : vector<2x8x8xf32>
    %215 = tpu.matmul %213, %214, %cst_84 {dimension_numbers = #tpu.dot_dimension_numbers<[2], [2], [1], [1], [0, 0, 0, 1, 1, 1], [0], [0]>} : vector<2x8x16xbf16>, vector<2x8x16xbf16>, vector<2x8x8xf32> -> vector<2x8x8xf32>
    "tpu.trace_stop"() : () -> ()
    %cst_85 = arith.constant 2.500000e-01 : f32
    %216 = vector.broadcast %cst_85 : f32 to vector<2x8x8xf32>
    %217 = arith.mulf %215, %216 : vector<2x8x8xf32>
    %cst_86 = arith.constant dense<0xFF800000> : vector<2x8xf32>
    %218 = vector.multi_reduction <maximumf>, %217, %cst_86 [2] : vector<2x8x8xf32> to vector<2x8xf32>
    %219 = vector.shape_cast %218 : vector<2x8xf32> to vector<2x8x1xf32>
    %220 = vector.broadcast %219 : vector<2x8x1xf32> to vector<2x8x8xf32>
    %221 = arith.subf %217, %220 : vector<2x8x8xf32>
    %222 = math.exp %221 : vector<2x8x8xf32>
    %cst_87 = arith.constant dense<0.000000e+00> : vector<2x8xf32>
    %223 = vector.multi_reduction <add>, %222, %cst_87 [2] : vector<2x8x8xf32> to vector<2x8xf32>
    %224 = vector.shape_cast %223 : vector<2x8xf32> to vector<2x8x1xf32>
    %225 = tpu.reciprocal %224 {approx = true} : vector<2x8x1xf32> -> vector<2x8x1xf32>
    %226 = vector.broadcast %225 : vector<2x8x1xf32> to vector<2x8x8xf32>
    %227 = arith.mulf %222, %226 : vector<2x8x8xf32>
    %228 = arith.truncf %227 : vector<2x8x8xf32> to vector<2x8x8xbf16>
    %229 = arith.truncf %212 : vector<2x8x16xf32> to vector<2x8x16xbf16>
    "tpu.trace_start"() <{level = 10 : i32, message = "bqk,bkd->bqd"}> : () -> ()
    %cst_88 = arith.constant dense<0.000000e+00> : vector<2x8x16xf32>
    %230 = tpu.matmul %228, %229, %cst_88 {dimension_numbers = #tpu.dot_dimension_numbers<[2], [1], [1], [2], [0, 0, 0, 1, 1, 2], [0], [0]>} : vector<2x8x8xbf16>, vector<2x8x16xbf16>, vector<2x8x16xf32> -> vector<2x8x16xf32>
    "tpu.trace_stop"() : () -> ()
    %231 = vector.shape_cast %230 : vector<2x8x16xf32> to vector<16x16xf32>
    %232 = tpu.concatenate %206, %231 in 1 : vector<16x16xf32>, vector<16x16xf32> -> vector<16x32xf32>
    %c1_89 = arith.constant 1 : index
    %c0_90 = arith.constant 0 : index
    %c0_91 = arith.constant 0 : index
    %233 = vector.load %arg5[%c1_89, %c0_90, %c0_91] : memref<2x32x32xf32, #tpu.memory_space<vmem>>, vector<1x32x32xf32>
    %234 = vector.shape_cast %233 : vector<1x32x32xf32> to vector<32x32xf32>
    %235 = arith.truncf %232 : vector<16x32xf32> to vector<16x32xbf16>
    %236 = arith.truncf %234 : vector<32x32xf32> to vector<32x32xbf16>
    %cst_92 = arith.constant dense<0.000000e+00> : vector<16x32xf32>
    %237 = tpu.matmul %235, %236, %cst_92 {dimension_numbers = #tpu.dot_dimension_numbers<[1], [0], [0], [1], [0, 0, 1, 1], [], []>} : vector<16x32xbf16>, vector<32x32xbf16>, vector<16x32xf32> -> vector<16x32xf32>
    %c1_93 = arith.constant 1 : index
    %c0_94 = arith.constant 0 : index
    %c0_95 = arith.constant 0 : index
    %238 = vector.load %arg6[%c1_93, %c0_94, %c0_95] : memref<2x1x32xf32, #tpu.memory_space<vmem>>, vector<1x1x32xf32>
    %239 = vector.shape_cast %238 : vector<1x1x32xf32> to vector<1x32xf32>
    %240 = vector.broadcast %239 : vector<1x32xf32> to vector<16x32xf32>
    %241 = arith.addf %237, %240 : vector<16x32xf32>
    %242 = arith.addf %172, %241 : vector<16x32xf32>
    %c1_96 = arith.constant 1 : index
    %c0_97 = arith.constant 0 : index
    %c0_98 = arith.constant 0 : index
    %243 = vector.load %arg7[%c1_96, %c0_97, %c0_98] : memref<2x1x32xf32, #tpu.memory_space<vmem>>, vector<1x1x32xf32>
    %244 = vector.shape_cast %243 : vector<1x1x32xf32> to vector<1x32xf32>
    %c1_99 = arith.constant 1 : index
    %c0_100 = arith.constant 0 : index
    %c0_101 = arith.constant 0 : index
    %245 = vector.load %arg8[%c1_99, %c0_100, %c0_101] : memref<2x1x32xf32, #tpu.memory_space<vmem>>, vector<1x1x32xf32>
    %246 = vector.shape_cast %245 : vector<1x1x32xf32> to vector<1x32xf32>
    %cst_102 = arith.constant dense<0.000000e+00> : vector<16xf32>
    %247 = vector.multi_reduction <add>, %242, %cst_102 [1] : vector<16x32xf32> to vector<16xf32>
    %248 = vector.shape_cast %247 : vector<16xf32> to vector<16x1xf32>
    %cst_103 = arith.constant 3.200000e+01 : f32
    %249 = vector.broadcast %cst_103 : f32 to vector<16x1xf32>
    %250 = arith.divf %248, %249 : vector<16x1xf32>
    %251 = vector.broadcast %250 : vector<16x1xf32> to vector<16x32xf32>
    %252 = arith.subf %242, %251 : vector<16x32xf32>
    %253 = arith.mulf %252, %252 : vector<16x32xf32>
    %cst_104 = arith.constant dense<0.000000e+00> : vector<16xf32>
    %254 = vector.multi_reduction <add>, %253, %cst_104 [1] : vector<16x32xf32> to vector<16xf32>
    %255 = vector.shape_cast %254 : vector<16xf32> to vector<16x1xf32>
    %cst_105 = arith.constant 3.200000e+01 : f32
    %256 = vector.broadcast %cst_105 : f32 to vector<16x1xf32>
    %257 = arith.divf %255, %256 : vector<16x1xf32>
    %cst_106 = arith.constant 9.99999996E-13 : f32
    %258 = vector.broadcast %cst_106 : f32 to vector<16x1xf32>
    %259 = arith.addf %257, %258 : vector<16x1xf32>
    %260 = math.rsqrt %259 : vector<16x1xf32>
    %261 = vector.broadcast %260 : vector<16x1xf32> to vector<16x32xf32>
    %262 = arith.mulf %252, %261 : vector<16x32xf32>
    %263 = vector.broadcast %244 : vector<1x32xf32> to vector<16x32xf32>
    %264 = arith.mulf %262, %263 : vector<16x32xf32>
    %265 = vector.broadcast %246 : vector<1x32xf32> to vector<16x32xf32>
    %266 = arith.addf %264, %265 : vector<16x32xf32>
    %c1_107 = arith.constant 1 : index
    %c0_108 = arith.constant 0 : index
    %c0_109 = arith.constant 0 : index
    %267 = vector.load %arg9[%c1_107, %c0_108, %c0_109] : memref<2x32x64xf32, #tpu.memory_space<vmem>>, vector<1x32x64xf32>
    %268 = vector.shape_cast %267 : vector<1x32x64xf32> to vector<32x64xf32>
    %269 = arith.truncf %266 : vector<16x32xf32> to vector<16x32xbf16>
    %270 = arith.truncf %268 : vector<32x64xf32> to vector<32x64xbf16>
    %cst_110 = arith.constant dense<0.000000e+00> : vector<16x64xf32>
    %271 = tpu.matmul %269, %270, %cst_110 {dimension_numbers = #tpu.dot_dimension_numbers<[1], [0], [0], [1], [0, 0, 1, 1], [], []>} : vector<16x32xbf16>, vector<32x64xbf16>, vector<16x64xf32> -> vector<16x64xf32>
    %c1_111 = arith.constant 1 : index
    %c0_112 = arith.constant 0 : index
    %c0_113 = arith.constant 0 : index
    %272 = vector.load %arg10[%c1_111, %c0_112, %c0_113] : memref<2x1x64xf32, #tpu.memory_space<vmem>>, vector<1x1x64xf32>
    %273 = vector.shape_cast %272 : vector<1x1x64xf32> to vector<1x64xf32>
    %274 = vector.broadcast %273 : vector<1x64xf32> to vector<16x64xf32>
    %275 = arith.addf %271, %274 : vector<16x64xf32>
    %cst_114 = arith.constant 5.000000e-01 : f32
    %276 = vector.broadcast %cst_114 : f32 to vector<16x64xf32>
    %277 = arith.mulf %276, %275 : vector<16x64xf32>
    %cst_115 = arith.constant 4.471500e-02 : f32
    %278 = vector.broadcast %cst_115 : f32 to vector<16x64xf32>
    %279 = arith.mulf %278, %275 : vector<16x64xf32>
    %280 = arith.mulf %279, %275 : vector<16x64xf32>
    %281 = arith.mulf %280, %275 : vector<16x64xf32>
    %282 = arith.addf %275, %281 : vector<16x64xf32>
    %cst_116 = arith.constant 0.797884583 : f32
    %283 = vector.broadcast %cst_116 : f32 to vector<16x64xf32>
    %284 = arith.mulf %283, %282 : vector<16x64xf32>
    %285 = math.tanh %284 : vector<16x64xf32>
    %cst_117 = arith.constant 1.000000e+00 : f32
    %286 = vector.broadcast %cst_117 : f32 to vector<16x64xf32>
    %287 = arith.addf %286, %285 : vector<16x64xf32>
    %288 = arith.mulf %277, %287 : vector<16x64xf32>
    %c1_118 = arith.constant 1 : index
    %c0_119 = arith.constant 0 : index
    %c0_120 = arith.constant 0 : index
    %289 = vector.load %arg11[%c1_118, %c0_119, %c0_120] : memref<2x64x32xf32, #tpu.memory_space<vmem>>, vector<1x64x32xf32>
    %290 = vector.shape_cast %289 : vector<1x64x32xf32> to vector<64x32xf32>
    %291 = arith.truncf %288 : vector<16x64xf32> to vector<16x64xbf16>
    %292 = arith.truncf %290 : vector<64x32xf32> to vector<64x32xbf16>
    %cst_121 = arith.constant dense<0.000000e+00> : vector<16x32xf32>
    %293 = tpu.matmul %291, %292, %cst_121 {dimension_numbers = #tpu.dot_dimension_numbers<[1], [0], [0], [1], [0, 0, 1, 1], [], []>} : vector<16x64xbf16>, vector<64x32xbf16>, vector<16x32xf32> -> vector<16x32xf32>
    %c1_122 = arith.constant 1 : index
    %c0_123 = arith.constant 0 : index
    %c0_124 = arith.constant 0 : index
    %294 = vector.load %arg12[%c1_122, %c0_123, %c0_124] : memref<2x1x32xf32, #tpu.memory_space<vmem>>, vector<1x1x32xf32>
    %295 = vector.shape_cast %294 : vector<1x1x32xf32> to vector<1x32xf32>
    %296 = vector.broadcast %295 : vector<1x32xf32> to vector<16x32xf32>
    %297 = arith.addf %293, %296 : vector<16x32xf32>
    %298 = arith.addf %266, %297 : vector<16x32xf32>
    %c1_125 = arith.constant 1 : index
    %c0_126 = arith.constant 0 : index
    %c0_127 = arith.constant 0 : index
    %299 = vector.load %arg13[%c1_125, %c0_126, %c0_127] : memref<2x1x32xf32, #tpu.memory_space<vmem>>, vector<1x1x32xf32>
    %300 = vector.shape_cast %299 : vector<1x1x32xf32> to vector<1x32xf32>
    %c1_128 = arith.constant 1 : index
    %c0_129 = arith.constant 0 : index
    %c0_130 = arith.constant 0 : index
    %301 = vector.load %arg14[%c1_128, %c0_129, %c0_130] : memref<2x1x32xf32, #tpu.memory_space<vmem>>, vector<1x1x32xf32>
    %302 = vector.shape_cast %301 : vector<1x1x32xf32> to vector<1x32xf32>
    %cst_131 = arith.constant dense<0.000000e+00> : vector<16xf32>
    %303 = vector.multi_reduction <add>, %298, %cst_131 [1] : vector<16x32xf32> to vector<16xf32>
    %304 = vector.shape_cast %303 : vector<16xf32> to vector<16x1xf32>
    %cst_132 = arith.constant 3.200000e+01 : f32
    %305 = vector.broadcast %cst_132 : f32 to vector<16x1xf32>
    %306 = arith.divf %304, %305 : vector<16x1xf32>
    %307 = vector.broadcast %306 : vector<16x1xf32> to vector<16x32xf32>
    %308 = arith.subf %298, %307 : vector<16x32xf32>
    %309 = arith.mulf %308, %308 : vector<16x32xf32>
    %cst_133 = arith.constant dense<0.000000e+00> : vector<16xf32>
    %310 = vector.multi_reduction <add>, %309, %cst_133 [1] : vector<16x32xf32> to vector<16xf32>
    %311 = vector.shape_cast %310 : vector<16xf32> to vector<16x1xf32>
    %cst_134 = arith.constant 3.200000e+01 : f32
    %312 = vector.broadcast %cst_134 : f32 to vector<16x1xf32>
    %313 = arith.divf %311, %312 : vector<16x1xf32>
    %cst_135 = arith.constant 9.99999996E-13 : f32
    %314 = vector.broadcast %cst_135 : f32 to vector<16x1xf32>
    %315 = arith.addf %313, %314 : vector<16x1xf32>
    %316 = math.rsqrt %315 : vector<16x1xf32>
    %317 = vector.broadcast %316 : vector<16x1xf32> to vector<16x32xf32>
    %318 = arith.mulf %308, %317 : vector<16x32xf32>
    %319 = vector.broadcast %300 : vector<1x32xf32> to vector<16x32xf32>
    %320 = arith.mulf %318, %319 : vector<16x32xf32>
    %321 = vector.broadcast %302 : vector<1x32xf32> to vector<16x32xf32>
    %322 = arith.addf %320, %321 : vector<16x32xf32>
    %323 = vector.shape_cast %322 : vector<16x32xf32> to vector<2x8x32xf32>
    %324 = vector.extract_strided_slice %323 {offsets = [0, 0, 0], sizes = [2, 1, 32], strides = [1, 1, 1]} : vector<2x8x32xf32> to vector<2x1x32xf32>
    %325 = vector.shape_cast %324 : vector<2x1x32xf32> to vector<2x32xf32>
    %c0_136 = arith.constant 0 : index
    %c0_137 = arith.constant 0 : index
    %326 = vector.load %arg15[%c0_136, %c0_137] : memref<32x32xf32, #tpu.memory_space<vmem>>, vector<32x32xf32>
    %327 = arith.truncf %325 : vector<2x32xf32> to vector<2x32xbf16>
    %328 = arith.truncf %326 : vector<32x32xf32> to vector<32x32xbf16>
    %cst_138 = arith.constant dense<0.000000e+00> : vector<2x32xf32>
    %329 = tpu.matmul %327, %328, %cst_138 {dimension_numbers = #tpu.dot_dimension_numbers<[1], [0], [0], [1], [0, 0, 1, 1], [], []>} : vector<2x32xbf16>, vector<32x32xbf16>, vector<2x32xf32> -> vector<2x32xf32>
    %c0_139 = arith.constant 0 : index
    %c0_140 = arith.constant 0 : index
    %330 = vector.load %arg16[%c0_139, %c0_140] : memref<1x32xf32, #tpu.memory_space<vmem>>, vector<1x32xf32>
    %331 = vector.broadcast %330 : vector<1x32xf32> to vector<2x32xf32>
    %332 = arith.addf %329, %331 : vector<2x32xf32>
    %333 = math.tanh %332 : vector<2x32xf32>
    %c0_141 = arith.constant 0 : index
    %c0_142 = arith.constant 0 : index
    %334 = vector.load %arg17[%c0_141, %c0_142] : memref<2x32xf32, #tpu.memory_space<vmem>>, vector<2x32xf32>
    tpu.vector_store %arg17[%c0_141, %c0_142], %333 {strides = array<i32>} : memref<2x32xf32, #tpu.memory_space<vmem>>, vector<2x32xf32>,
    return
  }
}

</mosaic_0001>

<bundles_post_ra>
// kernel: bert_encoder_forward.1
= control target key start
LH: loop header
LB: loop body
LE: loop exit
PB: predicated region body
PF: predicated region fallthrough
CT: control target
= control target key end

     0   :  { %s1821_s0 = inlined_call_operand.vmem [shape: f32[16,32], index: 0, kind: input, shape index: {}]   ;;  %s1822_s1 = inlined_call_operand.vmem [shape: f32[1,32], index: 1, kind: input, shape index: {}]   ;;  %s1823_s2 = inlined_call_operand.vmem [shape: f32[1,32], index: 2, kind: input, shape index: {}]   ;;  %s1824_s3 = inlined_call_operand.vmem [shape: f32[2,32,96], index: 3, kind: input, shape index: {}]   ;;  %s1825_s4 = inlined_call_operand.vmem [shape: f32[2,1,96], index: 4, kind: input, shape index: {}]   ;;  %s1826_s5 = inlined_call_operand.vmem [shape: f32[2,32,32], index: 5, kind: input, shape index: {}]   ;;  %s1827_s6 = inlined_call_operand.vmem [shape: f32[2,1,32], index: 6, kind: input, shape index: {}]   ;;  %s1828_s7 = inlined_call_operand.vmem [shape: f32[2,1,32], index: 7, kind: input, shape index: {}]   ;;  %s1829_s8 = inlined_call_operand.vmem [shape: f32[2,1,32], index: 8, kind: input, shape index: {}]   ;;  %s1830_s9 = inlined_call_operand.vmem [shape: f32[2,32,64], index: 9, kind: input, shape index: {}]   ;;  %s1831_s10 = inlined_call_operand.vmem [shape: f32[2,1,64], index: 10, kind: input, shape index: {}]   ;;  %s1832_s11 = inlined_call_operand.vmem [shape: f32[2,64,32], index: 11, kind: input, shape index: {}]   ;;  %s1833_s12 = inlined_call_operand.vmem [shape: f32[2,1,32], index: 12, kind: input, shape index: {}]   ;;  %s1834_s13 = inlined_call_operand.vmem [shape: f32[2,1,32], index: 13, kind: input, shape index: {}]   ;;  %s1835_s14 = inlined_call_operand.vmem [shape: f32[2,1,32], index: 14, kind: input, shape index: {}]   ;;  %s1836_s15 = inlined_call_operand.vmem [shape: f32[32,32], index: 15, kind: input, shape index: {}]   ;;  %s1837_s16 = inlined_call_operand.vmem [shape: f32[1,32], index: 16, kind: input, shape index: {}]   ;;  %s1838_s17 = inlined_call_operand.hbm [shape: f32[2,32], index: 17, kind: output, shape index: {}]  }
   0x1   :  { %1840 = sst [smem:[#allocation5_spill]] %s1821_s0 }
   0x2   :  { %1841 = sst [smem:[#allocation6_spill]] %s1822_s1 }
   0x3   :  { %s1842_s26 = sld [smem:[#allocation5_spill]]  ;;  %vm62_vm0 = vcmask 261120  }
   0x9   :  { %v58_v0 = vld [vmem:[%s1842_s26] sm:$0xff]  ;;  %v59_v2 = vld [vmem:[%s1842_s26 + $0x8] sm:$0xff] }
   0xa   :  { %v63_v1 = vsel %vm62_vm0, %v58_v0, 0.0  ;;  %v66_v3 = vsel %vm62_vm0, %v59_v2, 0.0 }
   0xb   :  { %64 = vadd.xlane.f32.xlu0 %v63_v1 }
   0xc   :  { %22 = vsyncpa [#allocation3], 0  ;;  %v1363_v4 = vmov 32.0   ;;  %v126_v21 = vld [vmem:[%s1824_s3 + $0x10] sm:$0xff]  ;;  %v127_v22 = vld [vmem:[%s1824_s3 + $0x18] sm:$0xff]  ;;  %s1843_s24 = sld [smem:[#allocation6_spill]] }
   0xd   :  { %1273 = vrcp.f32 %v1363_v4  ;;  %v130_v23 = vpack.c.bf16 %v127_v22, %v126_v21  ;;  %v124_v24 = vld [vmem:[%s1824_s3] sm:$0xff]  ;;  %v125_v25 = vld [vmem:[%s1824_s3 + $0x8] sm:$0xff]  ;;  %s1365_s29 = smov 96   ;;  %s1366_s0 = smov 112   ;;  %vm159_vm8 = vcmask 130048   ;;  %vm205_vm9 = vcmask 64512  }
   0xe   :  { %v129_v27 = vpack.c.bf16 %v125_v25, %v124_v24  ;;  %v1255_v51 = vld [vmem:[%s1823_s2] ss:$0 sm:$0xff]  ;;  %s1364_s2 = smov 80   ;;  %s1367_s30 = smov 64   ;;  %vm235_vm10 = vcmask 1043456  }
   0xf   :  { %144 = vmatpush.bf16.msra.mxu0 %v130_v23  ;;  %v1256_v56 = vld [vmem:[%s1825_s4] ss:$0 sm:$0xff]  ;;  %s1368_s18 = smov 48   ;;  %s1369_s22 = smov 16  }
  0x12   :  { %v1254_v46 = vld [vmem:[%s1843_s24] ss:$0 sm:$0xff] }
  0x13   :  { %67 = vadd.xlane.f32.xlu0 %v66_v3  ;;  %v1274_v5 = vpop.eup %1273  ;;  %145 = vmatpush.bf16.msra.mxu0 %v129_v27 }
  0x14   :  { %v70_v6 = vmul.f32 32.0, %v1274_v5  ;;  %vm74_vm1 = vweird.f32 %v1274_v5 }
  0x16   :  { %v71_v7 = vsub.f32 1.0, %v70_v6 }
  0x18   :  { %v72_v8 = vmul.f32 %v1274_v5, %v71_v7 }
  0x1a   :  { %v73_v9 = vadd.f32 %v1274_v5, %v72_v8 }
  0x1c   :  { %v1469_v10 = vsel %vm74_vm1, %v1274_v5, %v73_v9 }
  0x7e   :  { %v65_v11 = vpop.xlane.xlu0 %64 }
  0x7f   :  { %v76_v12 = vmul.f32 %v1469_v10, %v65_v11 }
  0x81   :  { %v78_v13 = vsub.f32 %v58_v0, %v76_v12 }
  0x83   :  { %v80_v14 = vmul.f32 %v78_v13, %v78_v13 }
  0x85   :  { %v82_v15 = vsel %vm62_vm0, %v80_v14, 0.0 }
  0x86   :  { %83 = vadd.xlane.f32.xlu1 %v82_v15  ;;  %v68_v16 = vpop.xlane.xlu0 %67 }
  0x87   :  { %v77_v17 = vmul.f32 %v1469_v10, %v68_v16 }
  0x89   :  { %v79_v18 = vsub.f32 %v59_v2, %v77_v17 }
  0x8b   :  { %v81_v19 = vmul.f32 %v79_v18, %v79_v18 }
  0x8d   :  { %v85_v20 = vsel %vm62_vm0, %v81_v19, 0.0 }
  0x8e   :  { %86 = vadd.xlane.f32.xlu1 %v85_v20 }
  0xf9   :  { %v84_v26 = vpop.xlane.xlu1 %83 }
  0xfa   :  { %v88_v28 = vmul.f32 %v84_v26, %v1469_v10 }
  0xfc   :  { %v90_v29 = vadd.f32 1e-12, %v88_v28 }
  0xfe   :  { %1275 = vrsqrt.f32 %v90_v29  ;;  %vm98_vm3 = vweird.f32 %v90_v29 }
 0x101   :  { %v87_v30 = vpop.xlane.xlu1 %86 }
 0x102   :  { %v89_v31 = vmul.f32 %v87_v30, %v1469_v10 }
 0x104   :  { %v1276_v32 = vpop.eup %1275  ;;  %v91_v33 = vadd.f32 1e-12, %v89_v31 }
 0x105   :  { %v93_v34 = vmul.f32 %v1276_v32, %v90_v29  ;;  %vm99_vm2 = vweird.f32 %v1276_v32 }
 0x106   :  { %1277 = vrsqrt.f32 %v91_v33  ;;  %vm100_vm4 = vmor %vm98_vm3, %vm99_vm2  ;;  %vm108_vm6 = vweird.f32 %v91_v33  ;;  %vm546_vm2 = vcmask 523264  }
 0x107   :  { %v94_v35 = vmul.f32 %v1276_v32, %v93_v34 }
 0x109   :  { %v95_v36 = vmul.f32 0.5, %v94_v35 }
 0x10b   :  { %v96_v37 = vsub.f32 1.5, %v95_v36 }
 0x10c   :  { %v1278_v38 = vpop.eup %1277 }
 0x10d   :  { %v97_v39 = vmul.f32 %v1276_v32, %v96_v37  ;;  %v103_v40 = vmul.f32 %v1278_v38, %v91_v33  ;;  %vm109_vm5 = vweird.f32 %v1278_v38 }
 0x10e   :  { %vm110_vm7 = vmor %vm108_vm6, %vm109_vm5 }
 0x10f   :  { %v104_v41 = vmul.f32 %v1278_v38, %v103_v40  ;;  %v101_v42 = vsel %vm100_vm4, %v1276_v32, %v97_v39 }
 0x110   :  { %v112_v45 = vmul.f32 %v101_v42, %v78_v13 }
 0x111   :  { %v105_v43 = vmul.f32 0.5, %v104_v41 }
 0x112   :  { %v117_v50 = vmul.f32 %v1254_v46, %v112_v45 }
 0x113   :  { %v106_v44 = vsub.f32 1.5, %v105_v43 }
 0x114   :  { %v1495_v53 = vadd.f32 %v1255_v51, %v117_v50 }
 0x115   :  { %v107_v47 = vmul.f32 %v1278_v38, %v106_v44 }
 0x117   :  { %v111_v48 = vsel %vm110_vm7, %v1278_v38, %v107_v47 }
 0x118   :  { %v113_v49 = vmul.f32 %v111_v48, %v79_v18 }
 0x11a   :  { %v118_v52 = vmul.f32 %v1254_v46, %v113_v49 }
 0x11c   :  { %v1497_v54 = vadd.f32 %v1255_v51, %v118_v52 }
 0x11e   :  { %v128_v55 = vpack.c.bf16 %v1497_v54, %v1495_v53 }
 0x120   :  { %1183 = vmatmul.msk.bf16.vlgmr.msra.gmra.mxu0 %vm62_vm0, %v128_v55 }
 0x19d   :  { %v147_v57 = vpop.f32.mrf.mxu0 }
 0x19e   :  { %v148_v58 = vadd.f32 %v1256_v56, %v147_v57 }
 0x1a0   :  { %v152_v59 = vpack.c.bf16 %v148_v58, %v148_v58 }
 0x1a2   :  { %v155_v60 = vunpack.c.l.b16 %v152_v59 }
 0x1a4   :  { %v156_v61 = vpack.c.b16 %v155_v60, %v155_v60 }
 0x1a5   :  { %v149_v62 = vpop.f32.mrf.mxu0 }
 0x1a6   :  { %v150_v63 = vadd.f32 %v1256_v56, %v149_v62  ;;  %275 = vrot.lane.b32.xlu0 %v156_v61, %s1364_s2  ;;  %157 = vrot.lane.b32.xlu2 %v156_v61, %s1365_s29 }
 0x1a8   :  { %v153_v0 = vpack.c.bf16 %v150_v63, %v150_v63 }
 0x1aa   :  { %v180_v1 = vunpack.c.l.b16 %v153_v0 }
 0x1ac   :  { %v1507_v2 = vpack.c.b16 %v180_v1, %v180_v1 }
 0x1ae   :  { %298 = vrot.lane.b32.xlu1 %v1507_v2, %s1364_s2  ;;  %182 = vrot.lane.b32.xlu2 %v1507_v2, %s1365_s29 }
 0x1b6   :  { %273 = vrot.lane.b32.xlu2 %v156_v61, %s1366_s0 }
 0x1be   :  { %296 = vrot.lane.b32.xlu2 %v1507_v2, %s1366_s0 }
 0x200   :  { %v158_v3 = vpop.permute.xlu2 %157 }
 0x201   :  { %v164_v4 = vsel %vm159_vm8, %v158_v3, 0 }
 0x202   :  { %173 = vmatpush.bf16.xpose.msra.mxu1 %v164_v4 }
 0x208   :  { %v183_v5 = vpop.permute.xlu2 %182 }
 0x209   :  { %1184 = vmatmul.msk.bf16.vlgmr.msra.gmra.mxu1 %vm159_vm8, %v152_v59  ;;  %v188_v6 = vsel %vm159_vm8, %v183_v5, 0 }
 0x20a   :  { %197 = vmatpush.bf16.xpose.msra.mxu2 %v188_v6 }
 0x210   :  { %v274_v9 = vpop.permute.xlu2 %273 }
 0x211   :  { %1185 = vmatmul.msk.bf16.vlgmr.msra.gmra.mxu2 %vm159_vm8, %v153_v0 }
 0x218   :  { %v276_v7 = vpop.permute.xlu0 %275  ;;  %v297_v13 = vpop.permute.xlu2 %296 }
 0x219   :  { %v281_v8 = vsel %vm159_vm8, %v276_v7, 0 }
 0x21a   :  { %290 = vmatpush.bf16.xpose.msrb.mxu0 %v281_v8 }
 0x220   :  { %v299_v11 = vpop.permute.xlu1 %298 }
 0x221   :  { %1188 = vmatmul.msk.bf16.vlgmr.msrb.gmra.mxu0 %vm159_vm8, %v274_v9  ;;  %v304_v12 = vsel %vm159_vm8, %v299_v11, 0 }
 0x222   :  { %313 = vmatpush.bf16.xpose.msrb.mxu1 %v304_v12 }
 0x229   :  { %1189 = vmatmul.msk.bf16.vlgmr.msrb.gmra.mxu1 %vm159_vm8, %v297_v13 }
 0x286   :  { %v175_v14 = vpop.f32.mrf.mxu1 }
 0x287   :  { %v203_v15 = vmul.f32 0.25, %v175_v14 }
 0x289   :  { %v206_v16 = vsel %vm205_vm9, %v203_v15, -inf }
 0x28a   :  { %207 = vmax.xlane.f32.xlu2 %v206_v16  ;;  %v400_v16 = vld [vmem:[%s1826_s5 + $0x18] sm:$0xff] }
 0x28e   :  { %v177_v17 = vpop.f32.mrf.mxu1 }
 0x294   :  { %v199_v18 = vpop.f32.mrf.mxu2 }
 0x295   :  { %v204_v19 = vmul.f32 0.25, %v199_v18 }
 0x297   :  { %v209_v20 = vsel %vm205_vm9, %v204_v19, -inf }
 0x298   :  { %210 = vmax.xlane.f32.xlu0 %v209_v20 }
 0x29c   :  { %v201_v21 = vpop.f32.mrf.mxu2 }
 0x29e   :  { %v292_v22 = vpop.f32.mrf.mxu0 }
 0x29f   :  { %v319_v23 = vmul.f32 0.25, %v292_v22 }
 0x2a1   :  { %v321_v24 = vsel %vm205_vm9, %v319_v23, -inf }
 0x2a2   :  { %322 = vmax.xlane.f32.xlu1 %v321_v24 }
 0x2a6   :  { %v294_v25 = vpop.f32.mrf.mxu0  ;;  %v315_v26 = vpop.f32.mrf.mxu1 }
 0x2a7   :  { %v320_v27 = vmul.f32 0.25, %v315_v26  ;;  %v397_v25 = vld [vmem:[%s1826_s5] sm:$0xff]  ;;  %v398_v26 = vld [vmem:[%s1826_s5 + $0x8] sm:$0xff] }
 0x2a9   :  { %v324_v28 = vsel %vm205_vm9, %v320_v27, -inf }
 0x2aa   :  { %325 = vmax.xlane.f32.xlu2 %v324_v28 }
 0x2ac   :  { %252 = vrot.lane.b32.xlu0 %v1507_v2, %s1367_s30 }
 0x2ae   :  { %v317_v29 = vpop.f32.mrf.mxu1 }
 0x2c2   :  { %230 = vrot.lane.b32.xlu2 %v156_v61, %s1367_s30 }
 0x2ca   :  { %345 = vrot.lane.b32.xlu2 %v156_v61, %s1368_s18 }
 0x2fd   :  { %v208_v30 = vpop.xlane.xlu2 %207 }
 0x2fe   :  { %v212_v31 = vsub.f32 %v203_v15, %v208_v30  ;;  %v399_v15 = vld [vmem:[%s1826_s5 + $0x10] sm:$0xff] }
 0x2ff   :  { %v403_v17 = vpack.c.bf16 %v400_v16, %v399_v15 }
 0x300   :  { %v214_v32 = vmul.f32 1.442695, %v212_v31 }
 0x301   :  { %417 = vmatpush.bf16.msra.mxu0 %v403_v17 }
 0x302   :  { %1279 = vpow2.f32 %v214_v32 }
 0x308   :  { %v1280_v33 = vpop.eup %1279 }
 0x309   :  { %v218_v34 = vsel %vm205_vm9, %v1280_v33, 0.0 }
 0x30a   :  { %219 = vadd.xlane.f32.xlu0 %v218_v34  ;;  %v1257_v34 = vld [vmem:[%s1827_s6] ss:$0 sm:$0xff] }
 0x30b   :  { %v211_v35 = vpop.xlane.xlu0 %210 }
 0x30c   :  { %v213_v36 = vsub.f32 %v204_v19, %v211_v35 }
 0x30e   :  { %v216_v37 = vmul.f32 1.442695, %v213_v36 }
 0x310   :  { %1281 = vpow2.f32 %v216_v37 }
 0x315   :  { %v323_v38 = vpop.xlane.xlu1 %322 }
 0x316   :  { %v1282_v39 = vpop.eup %1281  ;;  %v327_v40 = vsub.f32 %v319_v23, %v323_v38 }
 0x317   :  { %v221_v41 = vsel %vm205_vm9, %v1282_v39, 0.0 }
 0x318   :  { %v329_v42 = vmul.f32 1.442695, %v327_v40  ;;  %222 = vadd.xlane.f32.xlu1 %v221_v41 }
 0x31a   :  { %1283 = vpow2.f32 %v329_v42 }
 0x31d   :  { %v326_v43 = vpop.xlane.xlu2 %325 }
 0x31e   :  { %v328_v44 = vsub.f32 %v320_v27, %v326_v43  ;;  %366 = vrot.lane.b32.xlu0 %v1507_v2, %s1368_s18  ;;  %v253_v48 = vpop.permute.xlu0 %252  ;;  %v402_v27 = vpack.c.bf16 %v398_v26, %v397_v25  ;;  %v535_v25 = vld [vmem:[%s1832_s11 + $0x30] sm:$0xff]  ;;  %v536_v26 = vld [vmem:[%s1832_s11 + $0x38] sm:$0xff] }
 0x31f   :  { %v258_v51 = vsel %vm235_vm10, %v253_v48, 0 }
 0x320   :  { %v1284_v45 = vpop.eup %1283  ;;  %v331_v46 = vmul.f32 1.442695, %v328_v44  ;;  %418 = vmatpush.bf16.msra.mxu0 %v402_v27  ;;  %v541_v27 = vpack.c.bf16 %v536_v26, %v535_v25 }
 0x321   :  { %v333_v47 = vsel %vm205_vm9, %v1284_v45, 0.0 }
 0x322   :  { %1285 = vpow2.f32 %v331_v46  ;;  %334 = vadd.xlane.f32.xlu1 %v333_v47 }
 0x325   :  { %v231_v49 = vpop.permute.xlu2 %230 }
 0x326   :  { %v237_v50 = vsel %vm235_vm10, %v231_v49, 0 }
 0x327   :  { %246 = vmatpush.bf16.msra.mxu3 %v237_v50 }
 0x328   :  { %v1286_v52 = vpop.eup %1285 }
 0x329   :  { %v336_v55 = vsel %vm205_vm9, %v1286_v52, 0.0 }
 0x32a   :  { %337 = vadd.xlane.f32.xlu1 %v336_v55 }
 0x32b   :  { %267 = vmatpush.bf16.msrb.mxu3 %v258_v51 }
 0x32d   :  { %v346_v56 = vpop.permute.xlu2 %345 }
 0x32e   :  { %v351_v57 = vsel %vm235_vm10, %v346_v56, 0 }
 0x32f   :  { %360 = vmatpush.bf16.msrb.mxu2 %v351_v57 }
 0x333   :  { %554 = vmatpush.bf16.msra.mxu2 %v541_v27 }
 0x37d   :  { %v220_v58 = vpop.xlane.xlu0 %219 }
 0x37e   :  { %1287 = vrcp.f32 %v220_v58  ;;  %v483_v58 = vld [vmem:[%s1830_s9] sm:$0xff] }
 0x384   :  { %v1288_v59 = vpop.eup %1287 }
 0x385   :  { %v226_v60 = vmul.f32 %v1288_v59, %v1280_v33  ;;  %v484_v59 = vld [vmem:[%s1830_s9 + $0x8] sm:$0xff] }
 0x387   :  { %v228_v61 = vpack.c.bf16 %v226_v60, %v226_v60  ;;  %v488_v60 = vpack.c.bf16 %v484_v59, %v483_v58 }
 0x389   :  { %1186 = vmatmul.msk.bf16.vlgmr.msra.gmra.mxu3 %vm205_vm9, %v228_v61 }
 0x38b   :  { %v223_v62 = vpop.xlane.xlu1 %222 }
 0x38c   :  { %1289 = vrcp.f32 %v223_v62 }
 0x390   :  { %v367_v63 = vpop.permute.xlu0 %366 }
 0x391   :  { %v372_v0 = vsel %vm235_vm10, %v367_v63, 0 }
 0x392   :  { %v1290_v1 = vpop.eup %1289  ;;  %381 = vmatpush.bf16.msra.mxu3 %v372_v0 }
 0x393   :  { %v227_v2 = vmul.f32 %v1290_v1, %v1282_v39 }
 0x395   :  { %v335_v3 = vpop.xlane.xlu1 %334  ;;  %v229_v4 = vpack.c.bf16 %v227_v2, %v227_v2 }
 0x396   :  { %1291 = vrcp.f32 %v335_v3 }
 0x399   :  { %1187 = vmatmul.msk.bf16.vlgmr.msrb.gmra.mxu3 %vm205_vm9, %v229_v4 }
 0x39c   :  { %v1292_v5 = vpop.eup %1291 }
 0x39d   :  { %v341_v6 = vmul.f32 %v1292_v5, %v1284_v45  ;;  %v338_v7 = vpop.xlane.xlu1 %337 }
 0x39e   :  { %1293 = vrcp.f32 %v338_v7 }
 0x39f   :  { %v343_v8 = vpack.c.bf16 %v341_v6, %v341_v6 }
 0x3a1   :  { %1190 = vmatmul.msk.bf16.vlgmr.msrb.gmra.mxu2 %vm205_vm9, %v343_v8 }
 0x3a4   :  { %v1294_v9 = vpop.eup %1293 }
 0x3a5   :  { %v342_v11 = vmul.f32 %v1294_v9, %v1286_v52  ;;  %v486_v52 = vld [vmem:[%s1830_s9 + $0x18] sm:$0xff] }
 0x3a7   :  { %v344_v12 = vpack.c.bf16 %v342_v11, %v342_v11 }
 0x3a9   :  { %1191 = vmatmul.msk.bf16.vlgmr.msra.gmra.mxu3 %vm205_vm9, %v344_v12 }
 0x40c   :  { %v248_v13 = vpop.f32.mrf.mxu3 }
 0x414   :  { %v250_v14 = vpop.f32.mrf.mxu3 }
 0x415   :  { %v1258_v14 = vld [vmem:[%s1828_s7] ss:$0 sm:$0xff] }
 0x41c   :  { %v269_v18 = vpop.f32.mrf.mxu3 }
 0x424   :  { %v271_v19 = vpop.f32.mrf.mxu3  ;;  %v362_v20 = vpop.f32.mrf.mxu2 }
 0x42c   :  { %v364_v21 = vpop.f32.mrf.mxu2  ;;  %v383_v22 = vpop.f32.mrf.mxu3 }
 0x42d   :  { %v1244_v23 = vpack.i.bf16 %v383_v22, %v362_v20 }
 0x42f   :  { %1245 = vrot.lane.b32.xlu1 %v1244_v23, %s1369_s22 }
 0x434   :  { %v385_v24 = vpop.f32.mrf.mxu3 }
 0x4a1   :  { %v1246_v28 = vpop.permute.xlu1 %1245 }
 0x4a2   :  { %v1248_v29 = vunpack.i.h.bf16 %v1246_v28  ;;  %v1247_v30 = vunpack.i.l.bf16 %v1246_v28  ;;  %v533_v28 = vld [vmem:[%s1832_s11 + $0x20] sm:$0xff] }
 0x4a4   :  { %v396_v31 = vsel %vm159_vm8, %v269_v18, %v1248_v29  ;;  %v395_v32 = vsel %vm159_vm8, %v248_v13, %v1247_v30  ;;  %v1259_v18 = vld [vmem:[%s1829_s8] ss:$0 sm:$0xff]  ;;  %v534_v29 = vld [vmem:[%s1832_s11 + $0x28] sm:$0xff] }
 0x4a5   :  { %v401_v33 = vpack.c.bf16 %v396_v31, %v395_v32  ;;  %v540_v30 = vpack.c.bf16 %v534_v29, %v533_v28  ;;  %v531_v31 = vld [vmem:[%s1832_s11 + $0x10] sm:$0xff]  ;;  %v532_v32 = vld [vmem:[%s1832_s11 + $0x18] sm:$0xff] }
 0x4a7   :  { %1192 = vmatmul.msk.bf16.vlgmr.msra.gmra.mxu0 %vm62_vm0, %v401_v33  ;;  %555 = vmatpush.bf16.msra.mxu2 %v540_v30  ;;  %v539_v33 = vpack.c.bf16 %v532_v32, %v531_v31 }
 0x4ab   :  { %556 = vmatpush.bf16.msra.mxu2 %v539_v33 }
 0x524   :  { %v420_v35 = vpop.f32.mrf.mxu0 }
 0x525   :  { %v421_v36 = vadd.f32 %v1257_v34, %v420_v35  ;;  %v530_v35 = vld [vmem:[%s1832_s11 + $0x8] sm:$0xff] }
 0x527   :  { %v425_v37 = vadd.f32 %v421_v36, %v1495_v53  ;;  %v1260_v36 = vld [vmem:[%s1831_s10] ss:$0 sm:$0xff] }
 0x529   :  { %v429_v38 = vsel %vm62_vm0, %v425_v37, 0.0 }
 0x52a   :  { %430 = vadd.xlane.f32.xlu2 %v429_v38 }
 0x52c   :  { %v422_v39 = vpop.f32.mrf.mxu0 }
 0x52d   :  { %v423_v40 = vadd.f32 %v1257_v34, %v422_v39  ;;  %v529_v34 = vld [vmem:[%s1832_s11] sm:$0xff] }
 0x52f   :  { %v426_v41 = vadd.f32 %v423_v40, %v1497_v54  ;;  %v485_v54 = vld [vmem:[%s1830_s9 + $0x10] sm:$0xff] }
 0x530   :  { %v489_v55 = vpack.c.bf16 %v486_v52, %v485_v54 }
 0x531   :  { %v432_v42 = vsel %vm62_vm0, %v426_v41, 0.0 }
 0x532   :  { %433 = vadd.xlane.f32.xlu0 %v432_v42  ;;  %503 = vmatpush.bf16.msra.mxu1 %v489_v55 }
 0x536   :  { %504 = vmatpush.bf16.msra.mxu1 %v488_v60 }
 0x59d   :  { %v431_v43 = vpop.xlane.xlu2 %430 }
 0x59e   :  { %v435_v44 = vmul.f32 %v431_v43, %v1469_v10 }
 0x5a0   :  { %v437_v45 = vsub.f32 %v425_v37, %v435_v44  ;;  %v538_v37 = vpack.c.bf16 %v530_v35, %v529_v34 }
 0x5a2   :  { %v439_v46 = vmul.f32 %v437_v45, %v437_v45  ;;  %557 = vmatpush.bf16.msra.mxu2 %v538_v37 }
 0x5a4   :  { %v441_v47 = vsel %vm62_vm0, %v439_v46, 0.0 }
 0x5a5   :  { %v434_v48 = vpop.xlane.xlu0 %433  ;;  %442 = vadd.xlane.f32.xlu1 %v441_v47 }
 0x5a6   :  { %v436_v53 = vmul.f32 %v434_v48, %v1469_v10 }
 0x5a8   :  { %v438_v49 = vsub.f32 %v426_v41, %v436_v53 }
 0x5aa   :  { %v440_v50 = vmul.f32 %v438_v49, %v438_v49 }
 0x5ac   :  { %v444_v51 = vsel %vm62_vm0, %v440_v50, 0.0 }
 0x5ad   :  { %445 = vadd.xlane.f32.xlu2 %v444_v51 }
 0x618   :  { %v443_v56 = vpop.xlane.xlu1 %442 }
 0x619   :  { %v447_v57 = vmul.f32 %v443_v56, %v1469_v10 }
 0x61b   :  { %v449_v61 = vadd.f32 1e-12, %v447_v57 }
 0x61d   :  { %1295 = vrsqrt.f32 %v449_v61  ;;  %vm457_vm12 = vweird.f32 %v449_v61 }
 0x620   :  { %v446_v62 = vpop.xlane.xlu2 %445 }
 0x621   :  { %v448_v63 = vmul.f32 %v446_v62, %v1469_v10 }
 0x623   :  { %v1296_v0 = vpop.eup %1295  ;;  %v450_v1 = vadd.f32 1e-12, %v448_v63 }
 0x624   :  { %v452_v2 = vmul.f32 %v1296_v0, %v449_v61  ;;  %vm458_vm11 = vweird.f32 %v1296_v0  ;;  %v1261_v61 = vld [vmem:[%s1833_s12] ss:$0 sm:$0xff] }
 0x625   :  { %1297 = vrsqrt.f32 %v450_v1  ;;  %vm459_vm13 = vmor %vm457_vm12, %vm458_vm11  ;;  %vm467_vm15 = vweird.f32 %v450_v1 }
 0x626   :  { %v453_v3 = vmul.f32 %v1296_v0, %v452_v2 }
 0x628   :  { %v454_v4 = vmul.f32 0.5, %v453_v3 }
 0x62a   :  { %v455_v5 = vsub.f32 1.5, %v454_v4 }
 0x62b   :  { %v1298_v6 = vpop.eup %1297 }
 0x62c   :  { %v456_v7 = vmul.f32 %v1296_v0, %v455_v5  ;;  %v462_v8 = vmul.f32 %v1298_v6, %v450_v1  ;;  %vm468_vm14 = vweird.f32 %v1298_v6 }
 0x62d   :  { %vm469_vm1 = vmor %vm467_vm15, %vm468_vm14 }
 0x62e   :  { %v463_v9 = vmul.f32 %v1298_v6, %v462_v8  ;;  %v460_v11 = vsel %vm459_vm13, %v1296_v0, %v456_v7 }
 0x62f   :  { %v471_v15 = vmul.f32 %v460_v11, %v437_v45 }
 0x630   :  { %v464_v12 = vmul.f32 0.5, %v463_v9 }
 0x631   :  { %v476_v19 = vmul.f32 %v1258_v14, %v471_v15 }
 0x632   :  { %v465_v13 = vsub.f32 1.5, %v464_v12 }
 0x633   :  { %v481_v22 = vadd.f32 %v1259_v18, %v476_v19 }
 0x634   :  { %v466_v16 = vmul.f32 %v1298_v6, %v465_v13 }
 0x636   :  { %v470_v17 = vsel %vm469_vm1, %v1298_v6, %v466_v16 }
 0x637   :  { %v472_v20 = vmul.f32 %v470_v17, %v438_v49  ;;  %v1197_v17 = vld [vmem:[%s1824_s3 + $0x30] sm:$0xff] }
 0x639   :  { %v477_v21 = vmul.f32 %v1258_v14, %v472_v20 }
 0x63b   :  { %v482_v23 = vadd.f32 %v1259_v18, %v477_v21  ;;  %v1198_v18 = vld [vmem:[%s1824_s3 + $0x38] sm:$0xff] }
 0x63c   :  { %v629_v19 = vpack.c.bf16 %v1198_v18, %v1197_v17 }
 0x63d   :  { %v487_v24 = vpack.c.bf16 %v482_v23, %v481_v22 }
 0x63e   :  { %644 = vmatpush.bf16.msrb.mxu3 %v629_v19 }
 0x63f   :  { %1193 = vmatmul.msk.bf16.vlgmr.msra.gmra.mxu1 %vm62_vm0, %v487_v24 }
 0x6bc   :  { %v506_v38 = vpop.f32.mrf.mxu1 }
 0x6bd   :  { %v507_v39 = vadd.f32 %v1260_v36, %v506_v38 }
 0x6bf   :  { %v513_v40 = vmul.f32 0.044715, %v507_v39  ;;  %v511_v55 = vmul.f32 0.5, %v507_v39 }
 0x6c1   :  { %v515_v41 = vmul.f32 %v513_v40, %v507_v39 }
 0x6c3   :  { %v517_v42 = vmul.f32 %v515_v41, %v507_v39  ;;  %v1262_v41 = vld [vmem:[%s1834_s13] ss:$0 sm:$0xff] }
 0x6c4   :  { %v508_v43 = vpop.f32.mrf.mxu1 }
 0x6c5   :  { %v519_v44 = vadd.f32 %v517_v42, %v507_v39  ;;  %v509_v45 = vadd.f32 %v1260_v36, %v508_v43 }
 0x6c7   :  { %v514_v46 = vmul.f32 0.044715, %v509_v45  ;;  %v521_v47 = vmul.f32 0.7978846, %v519_v44  ;;  %v512_v56 = vmul.f32 0.5, %v509_v45 }
 0x6c9   :  { %v516_v48 = vmul.f32 %v514_v46, %v509_v45  ;;  %1299 = vtanh.f32 %v521_v47 }
 0x6cb   :  { %v518_v53 = vmul.f32 %v516_v48, %v509_v45 }
 0x6cd   :  { %v520_v49 = vadd.f32 %v518_v53, %v509_v45  ;;  %v1263_v45 = vld [vmem:[%s1835_s14] ss:$0 sm:$0xff] }
 0x6cf   :  { %v522_v50 = vmul.f32 0.7978846, %v520_v49  ;;  %v1300_v51 = vpop.eup %1299 }
 0x6d0   :  { %v525_v54 = vadd.f32 1.0, %v1300_v51  ;;  %v1264_v51 = vld [vmem:[%s1825_s4 + $0x1] ss:$0 sm:$0xff] }
 0x6d1   :  { %1301 = vtanh.f32 %v522_v50 }
 0x6d2   :  { %v527_v58 = vmul.f32 %v525_v54, %v511_v55 }
 0x6d7   :  { %v1302_v52 = vpop.eup %1301 }
 0x6d8   :  { %v526_v57 = vadd.f32 1.0, %v1302_v52 }
 0x6da   :  { %v528_v59 = vmul.f32 %v526_v57, %v512_v56 }
 0x6dc   :  { %v537_v60 = vpack.c.bf16 %v528_v59, %v527_v58 }
 0x6de   :  { %1194 = vmatmul.msk.bf16.vlgmr.msra.gmra.mxu2 %vm546_vm2, %v537_v60 }
 0x761   :  { %v559_v62 = vpop.f32.mrf.mxu2 }
 0x762   :  { %v560_v63 = vadd.f32 %v1261_v61, %v559_v62 }
 0x764   :  { %v564_v0 = vadd.f32 %v560_v63, %v481_v22  ;;  %v1195_v22 = vld [vmem:[%s1824_s3 + $0x20] sm:$0xff] }
 0x766   :  { %v568_v1 = vsel %vm62_vm0, %v564_v0, 0.0 }
 0x767   :  { %569 = vadd.xlane.f32.xlu0 %v568_v1 }
 0x769   :  { %v561_v2 = vpop.f32.mrf.mxu2 }
 0x76a   :  { %v562_v3 = vadd.f32 %v1261_v61, %v561_v2 }
 0x76c   :  { %v565_v4 = vadd.f32 %v562_v3, %v482_v23  ;;  %v1196_v23 = vld [vmem:[%s1824_s3 + $0x28] sm:$0xff] }
 0x76d   :  { %v628_v24 = vpack.c.bf16 %v1196_v23, %v1195_v22 }
 0x76e   :  { %v571_v5 = vsel %vm62_vm0, %v565_v4, 0.0 }
 0x76f   :  { %572 = vadd.xlane.f32.xlu2 %v571_v5  ;;  %645 = vmatpush.bf16.msrb.mxu3 %v628_v24 }
 0x7da   :  { %v570_v6 = vpop.xlane.xlu0 %569 }
 0x7db   :  { %v574_v7 = vmul.f32 %v570_v6, %v1469_v10 }
 0x7dd   :  { %v576_v8 = vsub.f32 %v564_v0, %v574_v7 }
 0x7df   :  { %v578_v9 = vmul.f32 %v576_v8, %v576_v8 }
 0x7e1   :  { %v580_v11 = vsel %vm62_vm0, %v578_v9, 0.0 }
 0x7e2   :  { %v573_v12 = vpop.xlane.xlu2 %572  ;;  %581 = vadd.xlane.f32.xlu0 %v580_v11 }
 0x7e3   :  { %v575_v13 = vmul.f32 %v573_v12, %v1469_v10 }
 0x7e5   :  { %v577_v14 = vsub.f32 %v565_v4, %v575_v13 }
 0x7e7   :  { %v579_v15 = vmul.f32 %v577_v14, %v577_v14 }
 0x7e9   :  { %v583_v16 = vsel %vm62_vm0, %v579_v15, 0.0 }
 0x7ea   :  { %584 = vadd.xlane.f32.xlu2 %v583_v16 }
 0x855   :  { %v582_v20 = vpop.xlane.xlu0 %581 }
 0x856   :  { %v586_v21 = vmul.f32 %v582_v20, %v1469_v10 }
 0x858   :  { %v588_v25 = vadd.f32 1e-12, %v586_v21 }
 0x85a   :  { %1303 = vrsqrt.f32 %v588_v25  ;;  %vm596_vm4 = vweird.f32 %v588_v25 }
 0x85d   :  { %v585_v26 = vpop.xlane.xlu2 %584 }
 0x85e   :  { %v587_v27 = vmul.f32 %v585_v26, %v1469_v10 }
 0x860   :  { %v1304_v28 = vpop.eup %1303  ;;  %v589_v29 = vadd.f32 1e-12, %v587_v27 }
 0x861   :  { %v591_v30 = vmul.f32 %v1304_v28, %v588_v25  ;;  %vm597_vm3 = vweird.f32 %v1304_v28 }
 0x862   :  { %1305 = vrsqrt.f32 %v589_v29  ;;  %vm598_vm5 = vmor %vm596_vm4, %vm597_vm3  ;;  %vm606_vm7 = vweird.f32 %v589_v29 }
 0x863   :  { %v592_v31 = vmul.f32 %v1304_v28, %v591_v30 }
 0x865   :  { %v593_v32 = vmul.f32 0.5, %v592_v31 }
 0x867   :  { %v594_v33 = vsub.f32 1.5, %v593_v32 }
 0x868   :  { %v1306_v34 = vpop.eup %1305 }
 0x869   :  { %v595_v35 = vmul.f32 %v1304_v28, %v594_v33  ;;  %v601_v36 = vmul.f32 %v1306_v34, %v589_v29  ;;  %vm607_vm6 = vweird.f32 %v1306_v34 }
 0x86a   :  { %vm608_vm11 = vmor %vm606_vm7, %vm607_vm6  ;;  %vm1145_vm6 = vcmask 1041409   ;;  %vm1165_vm7 = vcmask 254976  }
 0x86b   :  { %v602_v37 = vmul.f32 %v1306_v34, %v601_v36  ;;  %v599_v38 = vsel %vm598_vm5, %v1304_v28, %v595_v35 }
 0x86c   :  { %v610_v42 = vmul.f32 %v599_v38, %v576_v8 }
 0x86d   :  { %v603_v39 = vmul.f32 0.5, %v602_v37 }
 0x86e   :  { %v615_v46 = vmul.f32 %v1262_v41, %v610_v42 }
 0x86f   :  { %v604_v40 = vsub.f32 1.5, %v603_v39 }
 0x870   :  { %v1651_v53 = vadd.f32 %v1263_v45, %v615_v46 }
 0x871   :  { %v605_v43 = vmul.f32 %v1306_v34, %v604_v40 }
 0x873   :  { %v609_v44 = vsel %vm608_vm11, %v1306_v34, %v605_v43 }
 0x874   :  { %v611_v47 = vmul.f32 %v609_v44, %v577_v14 }
 0x876   :  { %v616_v48 = vmul.f32 %v1262_v41, %v611_v47 }
 0x878   :  { %v1653_v49 = vadd.f32 %v1263_v45, %v616_v48 }
 0x87a   :  { %v627_v50 = vpack.c.bf16 %v1653_v49, %v1651_v53 }
 0x87c   :  { %1200 = vmatmul.msk.bf16.vlgmr.msrb.gmra.mxu3 %vm62_vm0, %v627_v50 }
 0x8ff   :  { %v647_v54 = vpop.f32.mrf.mxu3 }
 0x900   :  { %v648_v52 = vadd.f32 %v1264_v51, %v647_v54 }
 0x902   :  { %v652_v55 = vpack.c.bf16 %v648_v52, %v648_v52 }
 0x904   :  { %v655_v56 = vunpack.c.l.b16 %v652_v55 }
 0x906   :  { %v1661_v57 = vpack.c.b16 %v655_v56, %v655_v56 }
 0x907   :  { %v649_v58 = vpop.f32.mrf.mxu3 }
 0x908   :  { %v650_v59 = vadd.f32 %v1264_v51, %v649_v58  ;;  %772 = vrot.lane.b32.xlu2 %v1661_v57, %s1364_s2  ;;  %657 = vrot.lane.b32.xlu0 %v1661_v57, %s1365_s29 }
 0x90a   :  { %v653_v60 = vpack.c.bf16 %v650_v59, %v650_v59 }
 0x90c   :  { %v679_v61 = vunpack.c.l.b16 %v653_v60 }
 0x90e   :  { %v1667_v62 = vpack.c.b16 %v679_v61, %v679_v61 }
 0x910   :  { %681 = vrot.lane.b32.xlu1 %v1667_v62, %s1365_s29  ;;  %795 = vrot.lane.b32.xlu0 %v1667_v62, %s1364_s2 }
 0x918   :  { %770 = vrot.lane.b32.xlu1 %v1661_v57, %s1366_s0  ;;  %793 = vrot.lane.b32.xlu0 %v1667_v62, %s1366_s0 }
 0x962   :  { %v773_v63 = vpop.permute.xlu2 %772 }
 0x963   :  { %v778_v2 = vsel %vm159_vm8, %v773_v63, 0 }
 0x97a   :  { %v658_v0 = vpop.permute.xlu0 %657 }
 0x97b   :  { %v663_v1 = vsel %vm159_vm8, %v658_v0, 0 }
 0x97c   :  { %672 = vmatpush.bf16.xpose.msrb.mxu0 %v663_v1 }
 0x982   :  { %v682_v3 = vpop.permute.xlu1 %681  ;;  %v796_v4 = vpop.permute.xlu0 %795 }
 0x983   :  { %v687_v5 = vsel %vm159_vm8, %v682_v3, 0  ;;  %v801_v6 = vsel %vm159_vm8, %v796_v4, 0  ;;  %1201 = vmatmul.msk.bf16.vlgmr.msrb.gmra.mxu0 %vm159_vm8, %v652_v55 }
 0x984   :  { %787 = vmatpush.bf16.xpose.msra.mxu0 %v778_v2  ;;  %696 = vmatpush.bf16.xpose.msrb.mxu1 %v687_v5 }
 0x98a   :  { %v771_v7 = vpop.permute.xlu1 %770  ;;  %v794_v8 = vpop.permute.xlu0 %793 }
 0x98b   :  { %1202 = vmatmul.msk.bf16.vlgmr.msrb.gmra.mxu1 %vm159_vm8, %v653_v60 }
 0x98c   :  { %810 = vmatpush.bf16.xpose.msra.mxu1 %v801_v6 }
 0x993   :  { %1205 = vmatmul.msk.bf16.vlgmr.msra.gmra.mxu0 %vm159_vm8, %v771_v7 }
 0x99b   :  { %1206 = vmatmul.msk.bf16.vlgmr.msra.gmra.mxu1 %vm159_vm8, %v794_v8 }
 0xa00   :  { %v674_v9 = vpop.f32.mrf.mxu0 }
 0xa01   :  { %v702_v11 = vmul.f32 0.25, %v674_v9 }
 0xa03   :  { %v704_v12 = vsel %vm205_vm9, %v702_v11, -inf }
 0xa04   :  { %705 = vmax.xlane.f32.xlu2 %v704_v12  ;;  %v1212_v12 = vld [vmem:[%s1826_s5 + $0x38] sm:$0xff] }
 0xa08   :  { %v676_v13 = vpop.f32.mrf.mxu0  ;;  %v698_v14 = vpop.f32.mrf.mxu1 }
 0xa09   :  { %v703_v15 = vmul.f32 0.25, %v698_v14 }
 0xa0b   :  { %v707_v16 = vsel %vm205_vm9, %v703_v15, -inf }
 0xa0c   :  { %708 = vmax.xlane.f32.xlu1 %v707_v16 }
 0xa10   :  { %v700_v17 = vpop.f32.mrf.mxu1  ;;  %v789_v18 = vpop.f32.mrf.mxu0 }
 0xa11   :  { %v816_v19 = vmul.f32 0.25, %v789_v18 }
 0xa13   :  { %v818_v20 = vsel %vm205_vm9, %v816_v19, -inf }
 0xa14   :  { %819 = vmax.xlane.f32.xlu0 %v818_v20 }
 0xa18   :  { %v791_v21 = vpop.f32.mrf.mxu0  ;;  %v812_v22 = vpop.f32.mrf.mxu1 }
 0xa19   :  { %v817_v23 = vmul.f32 0.25, %v812_v22  ;;  %v1209_v21 = vld [vmem:[%s1826_s5 + $0x20] sm:$0xff]  ;;  %v1210_v22 = vld [vmem:[%s1826_s5 + $0x28] sm:$0xff] }
 0xa1b   :  { %v821_v24 = vsel %vm205_vm9, %v817_v23, -inf }
 0xa1c   :  { %822 = vmax.xlane.f32.xlu2 %v821_v24 }
 0xa20   :  { %v814_v25 = vpop.f32.mrf.mxu1 }
 0xa34   :  { %728 = vrot.lane.b32.xlu2 %v1661_v57, %s1367_s30 }
 0xa3c   :  { %863 = vrot.lane.b32.xlu2 %v1667_v62, %s1368_s18 }
 0xa77   :  { %v706_v26 = vpop.xlane.xlu2 %705 }
 0xa78   :  { %v710_v27 = vsub.f32 %v702_v11, %v706_v26  ;;  %v1211_v11 = vld [vmem:[%s1826_s5 + $0x30] sm:$0xff] }
 0xa79   :  { %v901_v13 = vpack.c.bf16 %v1212_v12, %v1211_v11 }
 0xa7a   :  { %v712_v28 = vmul.f32 1.442695, %v710_v27 }
 0xa7b   :  { %916 = vmatpush.bf16.msrb.mxu0 %v901_v13 }
 0xa7c   :  { %1307 = vpow2.f32 %v712_v28 }
 0xa7f   :  { %v709_v29 = vpop.xlane.xlu1 %708 }
 0xa80   :  { %v711_v30 = vsub.f32 %v703_v15, %v709_v29 }
 0xa82   :  { %v1308_v31 = vpop.eup %1307  ;;  %v714_v32 = vmul.f32 1.442695, %v711_v30  ;;  %v1265_v30 = vld [vmem:[%s1827_s6 + $0x1] ss:$0 sm:$0xff] }
 0xa83   :  { %v716_v33 = vsel %vm205_vm9, %v1308_v31, 0.0 }
 0xa84   :  { %1309 = vpow2.f32 %v714_v32  ;;  %717 = vadd.xlane.f32.xlu1 %v716_v33 }
 0xa87   :  { %v820_v34 = vpop.xlane.xlu0 %819 }
 0xa88   :  { %v824_v35 = vsub.f32 %v816_v19, %v820_v34 }
 0xa8a   :  { %v1310_v36 = vpop.eup %1309  ;;  %v826_v37 = vmul.f32 1.442695, %v824_v35 }
 0xa8b   :  { %v719_v38 = vsel %vm205_vm9, %v1310_v36, 0.0 }
 0xa8c   :  { %1311 = vpow2.f32 %v826_v37  ;;  %720 = vadd.xlane.f32.xlu0 %v719_v38 }
 0xa8f   :  { %v823_v39 = vpop.xlane.xlu2 %822 }
 0xa90   :  { %v825_v40 = vsub.f32 %v817_v23, %v823_v39  ;;  %v900_v23 = vpack.c.bf16 %v1210_v22, %v1209_v21  ;;  %v1229_v21 = vld [vmem:[%s1832_s11 + $0x70] sm:$0xff]  ;;  %v1230_v22 = vld [vmem:[%s1832_s11 + $0x78] sm:$0xff] }
 0xa92   :  { %v1312_v41 = vpop.eup %1311  ;;  %v828_v42 = vmul.f32 1.442695, %v825_v40  ;;  %917 = vmatpush.bf16.msrb.mxu0 %v900_v23  ;;  %v1045_v23 = vpack.c.bf16 %v1230_v22, %v1229_v21  ;;  %v1129_v21 = vld [vmem:[%s1836_s15 + $0x8] sm:$0xff] }
 0xa93   :  { %v830_v43 = vsel %vm205_vm9, %v1312_v41, 0.0 }
 0xa94   :  { %1313 = vpow2.f32 %v828_v42  ;;  %831 = vadd.xlane.f32.xlu0 %v830_v43 }
 0xa97   :  { %v729_v44 = vpop.permute.xlu2 %728 }
 0xa98   :  { %v734_v45 = vsel %vm235_vm10, %v729_v44, 0 }
 0xa99   :  { %743 = vmatpush.bf16.msrb.mxu2 %v734_v45 }
 0xa9a   :  { %v1314_v46 = vpop.eup %1313 }
 0xa9b   :  { %v833_v47 = vsel %vm205_vm9, %v1314_v46, 0.0 }
 0xa9c   :  { %834 = vadd.xlane.f32.xlu0 %v833_v47 }
 0xa9d   :  { %749 = vrot.lane.b32.xlu1 %v1667_v62, %s1367_s30 }
 0xa9f   :  { %v864_v58 = vpop.permute.xlu2 %863 }
 0xaa0   :  { %v869_v62 = vsel %vm235_vm10, %v864_v58, 0 }
 0xab0   :  { %842 = vrot.lane.b32.xlu0 %v1661_v57, %s1368_s18 }
 0xaf7   :  { %v718_v48 = vpop.xlane.xlu1 %717 }
 0xaf8   :  { %1315 = vrcp.f32 %v718_v48  ;;  %v1220_v48 = vld [vmem:[%s1830_s9 + $0x38] sm:$0xff] }
 0xafe   :  { %v1316_v50 = vpop.eup %1315 }
 0xaff   :  { %v724_v51 = vmul.f32 %v1316_v50, %v1308_v31  ;;  %v721_v54 = vpop.xlane.xlu0 %720 }
 0xb00   :  { %1317 = vrcp.f32 %v721_v54 }
 0xb01   :  { %v726_v52 = vpack.c.bf16 %v724_v51, %v724_v51 }
 0xb03   :  { %1203 = vmatmul.msk.bf16.vlgmr.msrb.gmra.mxu2 %vm205_vm9, %v726_v52  ;;  %v1217_v52 = vld [vmem:[%s1830_s9 + $0x20] sm:$0xff] }
 0xb06   :  { %v1318_v56 = vpop.eup %1317 }
 0xb07   :  { %v832_v55 = vpop.xlane.xlu0 %831  ;;  %v725_v59 = vmul.f32 %v1318_v56, %v1310_v36 }
 0xb09   :  { %v727_v57 = vpack.c.bf16 %v725_v59, %v725_v59 }
 0xb0f   :  { %v750_v60 = vpop.permute.xlu1 %749  ;;  %v835_v63 = vpop.xlane.xlu0 %834 }
 0xb10   :  { %v755_v61 = vsel %vm235_vm10, %v750_v60, 0  ;;  %1319 = vrcp.f32 %v835_v63 }
 0xb11   :  { %764 = vmatpush.bf16.msra.mxu3 %v755_v61  ;;  %1321 = vrcp.f32 %v832_v55  ;;  %v1218_v55 = vld [vmem:[%s1830_s9 + $0x28] sm:$0xff] }
 0xb12   :  { %v990_v56 = vpack.c.bf16 %v1218_v55, %v1217_v52 }
 0xb14   :  { %1204 = vmatmul.msk.bf16.vlgmr.msra.gmra.mxu3 %vm205_vm9, %v727_v57 }
 0xb15   :  { %878 = vmatpush.bf16.msrb.mxu3 %v869_v62 }
 0xb16   :  { %v1320_v0 = vpop.eup %1319 }
 0xb17   :  { %v1322_v1 = vpop.eup %1321  ;;  %v839_v2 = vmul.f32 %v1320_v0, %v1314_v46 }
 0xb18   :  { %v838_v3 = vmul.f32 %v1322_v1, %v1312_v41 }
 0xb19   :  { %v841_v4 = vpack.c.bf16 %v839_v2, %v839_v2 }
 0xb1a   :  { %v840_v7 = vpack.c.bf16 %v838_v3, %v838_v3 }
 0xb22   :  { %v843_v5 = vpop.permute.xlu0 %842 }
 0xb23   :  { %v848_v6 = vsel %vm235_vm10, %v843_v5, 0 }
 0xb24   :  { %857 = vmatpush.bf16.msra.mxu2 %v848_v6  ;;  %1208 = vmatmul.msk.bf16.vlgmr.msrb.gmra.mxu3 %vm205_vm9, %v841_v4 }
 0xb27   :  { %1207 = vmatmul.msk.bf16.vlgmr.msra.gmra.mxu2 %vm205_vm9, %v840_v7 }
 0xb28   :  { %1058 = vmatpush.bf16.msrb.mxu2 %v1045_v23 }
 0xb86   :  { %v745_v8 = vpop.f32.mrf.mxu2 }
 0xb8e   :  { %v747_v9 = vpop.f32.mrf.mxu2 }
 0xb8f   :  { %v1266_v9 = vld [vmem:[%s1828_s7 + $0x1] ss:$0 sm:$0xff] }
 0xb97   :  { %v766_v14 = vpop.f32.mrf.mxu3 }
 0xb9f   :  { %v768_v15 = vpop.f32.mrf.mxu3 }
 0xba7   :  { %v880_v16 = vpop.f32.mrf.mxu3 }
 0xbaa   :  { %v859_v17 = vpop.f32.mrf.mxu2 }
 0xbab   :  { %v1249_v18 = vpack.i.bf16 %v880_v16, %v859_v17 }
 0xbad   :  { %1250 = vrot.lane.b32.xlu1 %v1249_v18, %s1369_s22  ;;  %s1174_s22 = sshll.u32 %s1838_s17, 4  ;;  %s1175_s22 = int_to_ptr.hbm [resolvable:$true] %s1174_s22 }
 0xbaf   :  { %v882_v19 = vpop.f32.mrf.mxu3 }
 0xbb2   :  { %v861_v20 = vpop.f32.mrf.mxu2 }
 0xc1f   :  { %v1251_v24 = vpop.permute.xlu1 %1250 }
 0xc20   :  { %v1253_v25 = vunpack.i.h.bf16 %v1251_v24  ;;  %v1252_v26 = vunpack.i.l.bf16 %v1251_v24  ;;  %v1227_v24 = vld [vmem:[%s1832_s11 + $0x60] sm:$0xff] }
 0xc22   :  { %v893_v27 = vsel %vm159_vm8, %v766_v14, %v1253_v25  ;;  %v892_v28 = vsel %vm159_vm8, %v745_v8, %v1252_v26  ;;  %v1267_v14 = vld [vmem:[%s1829_s8 + $0x1] ss:$0 sm:$0xff]  ;;  %v1228_v25 = vld [vmem:[%s1832_s11 + $0x68] sm:$0xff] }
 0xc23   :  { %v899_v29 = vpack.c.bf16 %v893_v27, %v892_v28  ;;  %v1044_v26 = vpack.c.bf16 %v1228_v25, %v1227_v24  ;;  %v1225_v27 = vld [vmem:[%s1832_s11 + $0x50] sm:$0xff]  ;;  %v1226_v28 = vld [vmem:[%s1832_s11 + $0x58] sm:$0xff] }
 0xc25   :  { %1214 = vmatmul.msk.bf16.vlgmr.msrb.gmra.mxu0 %vm62_vm0, %v899_v29  ;;  %1059 = vmatpush.bf16.msrb.mxu2 %v1044_v26  ;;  %v1043_v29 = vpack.c.bf16 %v1226_v28, %v1225_v27 }
 0xc29   :  { %1060 = vmatpush.bf16.msrb.mxu2 %v1043_v29 }
 0xca2   :  { %v919_v31 = vpop.f32.mrf.mxu0 }
 0xca3   :  { %v920_v32 = vadd.f32 %v1265_v30, %v919_v31  ;;  %v1224_v31 = vld [vmem:[%s1832_s11 + $0x48] sm:$0xff] }
 0xca5   :  { %v924_v33 = vadd.f32 %v920_v32, %v1651_v53  ;;  %v1268_v32 = vld [vmem:[%s1831_s10 + $0x1] ss:$0 sm:$0xff] }
 0xca7   :  { %v930_v34 = vsel %vm62_vm0, %v924_v33, 0.0 }
 0xca8   :  { %931 = vadd.xlane.f32.xlu2 %v930_v34 }
 0xcaa   :  { %v921_v35 = vpop.f32.mrf.mxu0 }
 0xcab   :  { %v922_v36 = vadd.f32 %v1265_v30, %v921_v35  ;;  %v1223_v30 = vld [vmem:[%s1832_s11 + $0x40] sm:$0xff] }
 0xcad   :  { %v925_v37 = vadd.f32 %v922_v36, %v1653_v49  ;;  %v1219_v49 = vld [vmem:[%s1830_s9 + $0x30] sm:$0xff] }
 0xcae   :  { %v991_v50 = vpack.c.bf16 %v1220_v48, %v1219_v49 }
 0xcaf   :  { %v933_v38 = vsel %vm62_vm0, %v925_v37, 0.0 }
 0xcb0   :  { %934 = vadd.xlane.f32.xlu1 %v933_v38  ;;  %1006 = vmatpush.bf16.msrb.mxu1 %v991_v50 }
 0xcb4   :  { %1007 = vmatpush.bf16.msrb.mxu1 %v990_v56 }
 0xd1b   :  { %v932_v39 = vpop.xlane.xlu2 %931 }
 0xd1c   :  { %v936_v40 = vmul.f32 %v932_v39, %v1469_v10 }
 0xd1e   :  { %v938_v41 = vsub.f32 %v924_v33, %v936_v40  ;;  %v1042_v33 = vpack.c.bf16 %v1224_v31, %v1223_v30 }
 0xd20   :  { %v940_v42 = vmul.f32 %v938_v41, %v938_v41  ;;  %1061 = vmatpush.bf16.msrb.mxu2 %v1042_v33 }
 0xd22   :  { %v942_v43 = vsel %vm62_vm0, %v940_v42, 0.0 }
 0xd23   :  { %v935_v44 = vpop.xlane.xlu1 %934  ;;  %943 = vadd.xlane.f32.xlu0 %v942_v43 }
 0xd24   :  { %v937_v53 = vmul.f32 %v935_v44, %v1469_v10 }
 0xd26   :  { %v939_v45 = vsub.f32 %v925_v37, %v937_v53 }
 0xd28   :  { %v941_v46 = vmul.f32 %v939_v45, %v939_v45 }
 0xd2a   :  { %v945_v47 = vsel %vm62_vm0, %v941_v46, 0.0 }
 0xd2b   :  { %946 = vadd.xlane.f32.xlu2 %v945_v47 }
 0xd96   :  { %v944_v51 = vpop.xlane.xlu0 %943 }
 0xd97   :  { %v948_v54 = vmul.f32 %v944_v51, %v1469_v10 }
 0xd99   :  { %v950_v58 = vadd.f32 1e-12, %v948_v54 }
 0xd9b   :  { %1323 = vrsqrt.f32 %v950_v58  ;;  %vm958_vm9 = vweird.f32 %v950_v58 }
 0xd9e   :  { %v947_v59 = vpop.xlane.xlu2 %946 }
 0xd9f   :  { %v949_v60 = vmul.f32 %v947_v59, %v1469_v10 }
 0xda1   :  { %v1324_v61 = vpop.eup %1323  ;;  %v951_v62 = vadd.f32 1e-12, %v949_v60 }
 0xda2   :  { %v953_v57 = vmul.f32 %v1324_v61, %v950_v58  ;;  %vm959_vm8 = vweird.f32 %v1324_v61  ;;  %v1269_v58 = vld [vmem:[%s1833_s12 + $0x1] ss:$0 sm:$0xff] }
 0xda3   :  { %1325 = vrsqrt.f32 %v951_v62  ;;  %vm960_vm10 = vmor %vm958_vm9, %vm959_vm8  ;;  %vm968_vm13 = vweird.f32 %v951_v62 }
 0xda4   :  { %v954_v63 = vmul.f32 %v1324_v61, %v953_v57 }
 0xda6   :  { %v955_v0 = vmul.f32 0.5, %v954_v63 }
 0xda8   :  { %v956_v1 = vsub.f32 1.5, %v955_v0 }
 0xda9   :  { %v1326_v2 = vpop.eup %1325 }
 0xdaa   :  { %v957_v3 = vmul.f32 %v1324_v61, %v956_v1  ;;  %v963_v4 = vmul.f32 %v1326_v2, %v951_v62  ;;  %vm969_vm12 = vweird.f32 %v1326_v2 }
 0xdab   :  { %vm970_vm14 = vmor %vm968_vm13, %vm969_vm12 }
 0xdac   :  { %v964_v5 = vmul.f32 %v1326_v2, %v963_v4  ;;  %v961_v6 = vsel %vm960_vm10, %v1324_v61, %v957_v3 }
 0xdad   :  { %v972_v11 = vmul.f32 %v961_v6, %v938_v41 }
 0xdae   :  { %v965_v7 = vmul.f32 0.5, %v964_v5 }
 0xdaf   :  { %v977_v15 = vmul.f32 %v1266_v9, %v972_v11 }
 0xdb0   :  { %v966_v8 = vsub.f32 1.5, %v965_v7 }
 0xdb1   :  { %v982_v18 = vadd.f32 %v1267_v14, %v977_v15 }
 0xdb2   :  { %v967_v12 = vmul.f32 %v1326_v2, %v966_v8 }
 0xdb4   :  { %v971_v13 = vsel %vm970_vm14, %v1326_v2, %v967_v12 }
 0xdb5   :  { %v973_v16 = vmul.f32 %v971_v13, %v939_v45 }
 0xdb7   :  { %v978_v17 = vmul.f32 %v1266_v9, %v973_v16  ;;  %v1130_v16 = vld [vmem:[%s1836_s15 + $0x10] sm:$0xff] }
 0xdb9   :  { %v983_v19 = vadd.f32 %v1267_v14, %v978_v17  ;;  %v1131_v17 = vld [vmem:[%s1836_s15 + $0x18] sm:$0xff] }
 0xdbb   :  { %v989_v20 = vpack.c.bf16 %v983_v19, %v982_v18 }
 0xdbd   :  { %1222 = vmatmul.msk.bf16.vlgmr.msrb.gmra.mxu1 %vm62_vm0, %v989_v20  ;;  %v1128_v20 = vld [vmem:[%s1836_s15] sm:$0xff] }
 0xdbe   :  { %v1134_v23 = vpack.c.bf16 %v1129_v21, %v1128_v20 }
 0xe3a   :  { %v1009_v34 = vpop.f32.mrf.mxu1 }
 0xe3b   :  { %v1010_v35 = vadd.f32 %v1268_v32, %v1009_v34 }
 0xe3d   :  { %v1016_v36 = vmul.f32 0.044715, %v1010_v35  ;;  %v1014_v50 = vmul.f32 0.5, %v1010_v35 }
 0xe3f   :  { %v1018_v37 = vmul.f32 %v1016_v36, %v1010_v35 }
 0xe41   :  { %v1020_v38 = vmul.f32 %v1018_v37, %v1010_v35 }
 0xe42   :  { %v1011_v39 = vpop.f32.mrf.mxu1 }
 0xe43   :  { %v1022_v40 = vadd.f32 %v1020_v38, %v1010_v35  ;;  %v1012_v41 = vadd.f32 %v1268_v32, %v1011_v39  ;;  %v1271_v39 = vld [vmem:[%s1835_s14 + $0x1] ss:$0 sm:$0xff]  ;;  %s1370_s14 = smov [#allocation2]  }
 0xe44   :  { %s1172_s18 = sshll.u32 %s1370_s14, 4  ;;  %s1173_s18 = int_to_ptr.vmem [resolvable:$true] %s1172_s18 }
 0xe45   :  { %v1017_v42 = vmul.f32 0.044715, %v1012_v41  ;;  %v1024_v43 = vmul.f32 0.7978846, %v1022_v40  ;;  %v1015_v51 = vmul.f32 0.5, %v1012_v41 }
 0xe47   :  { %v1019_v44 = vmul.f32 %v1017_v42, %v1012_v41  ;;  %1327 = vtanh.f32 %v1024_v43 }
 0xe49   :  { %v1021_v53 = vmul.f32 %v1019_v44, %v1012_v41 }
 0xe4b   :  { %v1023_v45 = vadd.f32 %v1021_v53, %v1012_v41 }
 0xe4d   :  { %v1025_v46 = vmul.f32 0.7978846, %v1023_v45  ;;  %v1328_v47 = vpop.eup %1327 }
 0xe4e   :  { %v1028_v49 = vadd.f32 1.0, %v1328_v47 }
 0xe4f   :  { %1329 = vtanh.f32 %v1025_v46 }
 0xe50   :  { %v1030_v52 = vmul.f32 %v1028_v49, %v1014_v50 }
 0xe55   :  { %v1330_v48 = vpop.eup %1329 }
 0xe56   :  { %v1029_v54 = vadd.f32 1.0, %v1330_v48 }
 0xe58   :  { %v1031_v55 = vmul.f32 %v1029_v54, %v1015_v51  ;;  %v1272_v54 = vld [vmem:[%s1837_s16] ss:$0 sm:$0xff] }
 0xe5a   :  { %v1041_v56 = vpack.c.bf16 %v1031_v55, %v1030_v52 }
 0xe5c   :  { %1232 = vmatmul.msk.bf16.vlgmr.msrb.gmra.mxu2 %vm546_vm2, %v1041_v56 }
 0xedf   :  { %v1063_v59 = vpop.f32.mrf.mxu2 }
 0xee0   :  { %v1064_v60 = vadd.f32 %v1269_v58, %v1063_v59 }
 0xee2   :  { %v1068_v61 = vadd.f32 %v1064_v60, %v982_v18  ;;  %v1135_v18 = vpack.c.bf16 %v1131_v17, %v1130_v16 }
 0xee4   :  { %v1074_v62 = vsel %vm62_vm0, %v1068_v61, 0.0  ;;  %1157 = vmatpush.bf16.msra.mxu3 %v1135_v18 }
 0xee5   :  { %1075 = vadd.xlane.f32.xlu2 %v1074_v62 }
 0xee7   :  { %v1065_v57 = vpop.f32.mrf.mxu2 }
 0xee8   :  { %v1066_v63 = vadd.f32 %v1269_v58, %v1065_v57  ;;  %1158 = vmatpush.bf16.msra.mxu3 %v1134_v23 }
 0xeea   :  { %v1069_v0 = vadd.f32 %v1066_v63, %v983_v19 }
 0xeec   :  { %v1077_v1 = vsel %vm62_vm0, %v1069_v0, 0.0 }
 0xeed   :  { %1078 = vadd.xlane.f32.xlu1 %v1077_v1 }
 0xf58   :  { %v1076_v2 = vpop.xlane.xlu2 %1075 }
 0xf59   :  { %v1080_v3 = vmul.f32 %v1076_v2, %v1469_v10 }
 0xf5b   :  { %v1082_v4 = vsub.f32 %v1068_v61, %v1080_v3 }
 0xf5d   :  { %v1084_v5 = vmul.f32 %v1082_v4, %v1082_v4 }
 0xf5f   :  { %v1086_v6 = vsel %vm62_vm0, %v1084_v5, 0.0 }
 0xf60   :  { %v1079_v7 = vpop.xlane.xlu1 %1078  ;;  %1087 = vadd.xlane.f32.xlu1 %v1086_v6 }
 0xf61   :  { %v1081_v8 = vmul.f32 %v1079_v7, %v1469_v10 }
 0xf63   :  { %v1083_v9 = vsub.f32 %v1069_v0, %v1081_v8 }
 0xf65   :  { %v1085_v11 = vmul.f32 %v1083_v9, %v1083_v9 }
 0xf67   :  { %v1089_v12 = vsel %vm62_vm0, %v1085_v11, 0.0 }
 0xf68   :  { %1090 = vadd.xlane.f32.xlu0 %v1089_v12 }
 0xfd3   :  { %v1088_v13 = vpop.xlane.xlu1 %1087 }
 0xfd4   :  { %v1092_v14 = vmul.f32 %v1088_v13, %v1469_v10 }
 0xfd6   :  { %v1094_v15 = vadd.f32 1e-12, %v1092_v14 }
 0xfd8   :  { %1331 = vrsqrt.f32 %v1094_v15  ;;  %vm1102_vm1 = vweird.f32 %v1094_v15 }
 0xfdb   :  { %v1091_v19 = vpop.xlane.xlu0 %1090 }
 0xfdc   :  { %v1093_v22 = vmul.f32 %v1091_v19, %v1469_v10  ;;  %v1270_v10 = vld [vmem:[%s1834_s13 + $0x1] ss:$0 sm:$0xff] }
 0xfde   :  { %v1332_v24 = vpop.eup %1331  ;;  %v1095_v25 = vadd.f32 1e-12, %v1093_v22 }
 0xfdf   :  { %v1097_v26 = vmul.f32 %v1332_v24, %v1094_v15  ;;  %vm1103_vm15 = vweird.f32 %v1332_v24 }
 0xfe0   :  { %1333 = vrsqrt.f32 %v1095_v25  ;;  %vm1104_vm2 = vmor %vm1102_vm1, %vm1103_vm15  ;;  %vm1112_vm4 = vweird.f32 %v1095_v25 }
 0xfe1   :  { %v1098_v27 = vmul.f32 %v1332_v24, %v1097_v26 }
 0xfe3   :  { %v1099_v28 = vmul.f32 0.5, %v1098_v27 }
 0xfe5   :  { %v1100_v29 = vsub.f32 1.5, %v1099_v28 }
 0xfe6   :  { %v1334_v30 = vpop.eup %1333 }
 0xfe7   :  { %v1101_v31 = vmul.f32 %v1332_v24, %v1100_v29  ;;  %v1107_v32 = vmul.f32 %v1334_v30, %v1095_v25  ;;  %vm1113_vm3 = vweird.f32 %v1334_v30 }
 0xfe8   :  { %vm1114_vm5 = vmor %vm1112_vm4, %vm1113_vm3 }
 0xfe9   :  { %v1105_v33 = vsel %vm1104_vm2, %v1332_v24, %v1101_v31  ;;  %v1108_v34 = vmul.f32 %v1334_v30, %v1107_v32 }
 0xfea   :  { %v1116_v36 = vmul.f32 %v1105_v33, %v1082_v4 }
 0xfeb   :  { %v1109_v35 = vmul.f32 0.5, %v1108_v34 }
 0xfec   :  { %v1121_v40 = vmul.f32 %v1270_v10, %v1116_v36 }
 0xfed   :  { %v1110_v37 = vsub.f32 1.5, %v1109_v35 }
 0xfee   :  { %v1126_v43 = vadd.f32 %v1271_v39, %v1121_v40 }
 0xfef   :  { %v1111_v38 = vmul.f32 %v1334_v30, %v1110_v37 }
 0xff0   :  { %v1132_v45 = vpack.c.bf16 %v1126_v43, %v1126_v43 }
 0xff1   :  { %v1115_v41 = vsel %vm1114_vm5, %v1334_v30, %v1111_v38 }
 0xff2   :  { %v1117_v42 = vmul.f32 %v1115_v41, %v1083_v9  ;;  %v1142_v49 = vunpack.c.l.b16 %v1132_v45 }
 0xff4   :  { %v1122_v44 = vmul.f32 %v1270_v10, %v1117_v42 }
 0xff6   :  { %v1127_v53 = vadd.f32 %v1271_v39, %v1122_v44 }
 0xff8   :  { %v1133_v46 = vpack.c.bf16 %v1127_v53, %v1127_v53 }
 0xffa   :  { %v1143_v47 = vunpack.c.l.b16 %v1133_v46 }
 0xffc   :  { %v1144_v48 = vrot.slane %v1143_v47, 7 }
 0xffe   :  { %v1146_v50 = vsel %vm1145_vm6, %v1144_v48, %v1142_v49 }
 0xfff   :  { %v1147_v51 = vpack.c.b16 %v1146_v50, %v1146_v50 }
0x1001   :  { %1235 = vmatmul.msk.bf16.vlgmr.msra.gmra.mxu3 %vm62_vm0, %v1147_v51 }
0x1084   :  { %v1160_v52 = vpop.f32.mrf.mxu3 }
0x1085   :  { %v1161_v55 = vadd.f32 %v1272_v54, %v1160_v52 }
0x1087   :  { %1335 = vtanh.f32 %v1161_v55 }
0x108c   :  { %v1162_v56 = vpop.f32.mrf.mxu3 }
0x108d   :  { %v1336_v58 = vpop.eup %1335 }
0x108e   :  { %1166 = vst.msk [vmem:[#allocation2] sm:$0x3] %vm1165_vm7, %v1336_v58 }
0x108f   :  { %1177 = dma.vmem_to_hbm [thread:$0]  %s1173_s18, 32, %s1175_s22, [#allocation3]  }
0x1090   :  { %1361 = dma.done.wait [#allocation3], 32  }
0x1091   :  { %1362 = vsyncadd [#allocation3], 4294967264 }
0x1092   :  { %1182 = vsyncpa [#allocation3], 1 }

</bundles_post_ra>
